<compile_context>
chip_gen: v6e
topology: v6e:2x2x1
jax: 0.10.0
libtpu: 0.0.40
codegen_flags: <defaults>
</compile_context>

<pallas_src>
import math
from functools import partial

import jax
import jax.numpy as jnp
from jax.experimental import pallas as pl
from jax.experimental.pallas import tpu as pltpu

_LN2 = math.log(2.0)
_LANE = 128      # lane width of a vreg / MXU-friendly feature multiple
_SUBLANE = 8     # f32 sublane multiple (row-tile granularity)


def _shifted_softplus(x):
    # softplus(x) - ln(2); exp/log1p ride the EUP slot, subtract rides the VPU.
    return jax.nn.softplus(x) - _LN2


def _round_up(n, m):
    return (n + m - 1) // m * m


def _cdiv(a, b):
    return -(-a // b)


def _physical_vmem_bytes():
    """Best-effort per-core VMEM query; conservative v7x fallback (64 MiB)."""
    try:
        info = pltpu.get_tpu_info()
        cap = getattr(info, "vmem_capacity_bytes", None)
        if cap:
            return int(cap)
    except Exception:
        pass
    return 64 * 1024 * 1024


def _vmem_estimate(tm, fp, r, wbytes, weight_bufs):
    """Rough VMEM footprint (bytes) of one kernel instance."""
    io = 2 * 2 * tm * fp * 4                       # double-buffered x-in + out
    wts = weight_bufs * 2 * r * fp * fp * wbytes   # resident w1t + w2t stacks
    bias = weight_bufs * 2 * r * fp * 4            # resident b1 + b2 (f32)
    compute = 4 * tm * fp * 4                      # live f32 temporaries
    return io + wts + bias + compute


def _residual_stack_kernel(x_ref, w1t_ref, b1_ref, w2t_ref, b2_ref, o_ref,
                           *, num_residual):
    # x_ref:            [tm, Fp] row tile (f32)
    # w1t_ref, w2t_ref: [R, Fp, Fp] pre-transposed weights (bf16 or f32)
    # b1_ref, b2_ref:   [R, Fp] f32 biases
    w_dtype = w1t_ref.dtype
    x = x_ref[...].astype(jnp.float32)
    for r in range(num_residual):            # R is small & static -> unrolled
        y = _shifted_softplus(x)
        y = jnp.dot(y.astype(w_dtype), w1t_ref[r],
                    preferred_element_type=jnp.float32) + b1_ref[r:r + 1, :]
        y = _shifted_softplus(y)
        y = jnp.dot(y.astype(w_dtype), w2t_ref[r],
                    preferred_element_type=jnp.float32) + b2_ref[r:r + 1, :]
        x = x + y
    o_ref[...] = x.astype(o_ref.dtype)


def prepare_params(w1, b1, w2, b2, *, lane_multiple=_LANE,
                   weights_dtype=jnp.bfloat16):
    """One-time parameter prep (model setup, NOT per forward call).

    Transposes PyTorch-layout [out, in] linear weights to [in, out] so the
    kernel computes y @ Wt == y @ W.T, zero-pads the feature dim to a
    lane-dense multiple of 128, and casts weights to `weights_dtype`
    (bf16 -> native fast MXU path, f32 -> exact). Biases stay f32.
    """
    R, F, _ = w1.shape
    Fp = _round_up(F, lane_multiple)
    pad = Fp - F
    w1t = jnp.pad(jnp.transpose(w1, (0, 2, 1)), ((0, 0), (0, pad), (0, pad)))
    w2t = jnp.pad(jnp.transpose(w2, (0, 2, 1)), ((0, 0), (0, pad), (0, pad)))
    b1p = jnp.pad(b1, ((0, 0), (0, pad))).astype(jnp.float32)
    b2p = jnp.pad(b2, ((0, 0), (0, pad))).astype(jnp.float32)
    return w1t.astype(weights_dtype), b1p, w2t.astype(weights_dtype), b2p


def residual_stack(x, w1t, b1, w2t, b2, *, tile_m=256):
    """Apply the residual stack.

    Args:
      x:  [N, F] float32 input features.
      w1t, b1, w2t, b2: outputs of prepare_params() (padded feature dim Fp).
    Returns:
      [N, F] output features.
    """
    N, F = x.shape
    R, Fp, Fp2 = w1t.shape
    assert Fp == Fp2 and Fp % _LANE == 0 and F <= Fp
    wbytes = jnp.dtype(w1t.dtype).itemsize

    physical_vmem = _physical_vmem_bytes()
    budget = int(0.75 * physical_vmem)

    Np8 = _round_up(N, _SUBLANE)

    # ---- row-tile selection -------------------------------------------------
    # Preferred MXU-friendly tile; the weight/bias VMEM term is tm-independent,
    # so shrink only while over budget and never below the 128 floor (tiny
    # tiles starve the MXU and maximize per-step overhead without fixing a
    # weight-dominated overflow).
    tm = min(_round_up(tile_m, _SUBLANE), Np8)
    while tm > 128 and _vmem_estimate(tm, Fp, R, wbytes, 1) > budget:
        tm = max(128, _round_up(tm // 2, _SUBLANE))
    # TODO(synk): weight-streaming path (memory_space=pl.ANY + double-buffered
    # pltpu.make_async_copy of one [Fp, Fp] slab per matmul per block) for
    # R*Fp^2 stacks that cannot stay resident in v7x's 64 MiB VMEM (Fp >~ 1024).

    # ---- grid + balanced tiles ----------------------------------------------
    grid_m = _cdiv(Np8, tm)
    # Guarantee >= 2 grid steps when there is enough work so the "parallel"
    # row axis can be sharded across v7x's two TensorCores.
    if grid_m == 1 and Np8 >= 2 * 128:
        grid_m = 2
    # Balance tiles instead of padding N up to a multiple of tile_m (avoids
    # spending MXU flops / EUP transcendentals / DMA on all-zero rows).
    tm = _round_up(_cdiv(Np8, grid_m), _SUBLANE)
    Np = grid_m * tm

    xp = x if (Np == N and Fp == F) else jnp.pad(x, ((0, Np - N), (0, Fp - F)))

    footprint = _vmem_estimate(tm, Fp, R, wbytes, 1)
    vmem_limit = int(min(int(0.9 * physical_vmem),
                         max(footprint + (4 << 20), 32 << 20)))

    cost = pl.CostEstimate(
        flops=4 * R * Np * Fp * Fp,
        transcendentals=4 * R * Np * Fp,
        bytes_accessed=2 * Np * Fp * 4 + 2 * R * Fp * Fp * wbytes + 2 * R * Fp * 4,
    )

    kernel = partial(_residual_stack_kernel, num_residual=R)
    out_shape = jax.ShapeDtypeStruct((Np, Fp), x.dtype)

    def _make_call(single_buffer_weights):
        wkw = dict(pipeline_mode=pl.Buffered(1)) if single_buffer_weights else {}
        in_specs = [
            pl.BlockSpec((tm, Fp), lambda i: (i, 0)),                # x row tile
            pl.BlockSpec((R, Fp, Fp), lambda i: (0, 0, 0), **wkw),   # w1t resident
            pl.BlockSpec((R, Fp), lambda i: (0, 0), **wkw),          # b1  resident
            pl.BlockSpec((R, Fp, Fp), lambda i: (0, 0, 0), **wkw),   # w2t resident
            pl.BlockSpec((R, Fp), lambda i: (0, 0), **wkw),          # b2  resident
        ]
        return pl.pallas_call(
            kernel,
            out_shape=out_shape,
            grid_spec=pltpu.PrefetchScalarGridSpec(
                num_scalar_prefetch=0,
                grid=(grid_m,),
                in_specs=in_specs,
                out_specs=pl.BlockSpec((tm, Fp), lambda i: (i, 0)),
            ),
            compiler_params=pltpu.CompilerParams(
                dimension_semantics=("parallel",),   # shardable across v7x TCs
                vmem_limit_bytes=vmem_limit,
            ),
            cost_estimate=cost,
        )

    try:
        out = _make_call(True)(xp, w1t, b1, w2t, b2)
    except Exception:
        # Fallback if this JAX build rejects pipeline_mode=pl.Buffered(1):
        # weights get the default double-buffering (same results, more VMEM).
        out = _make_call(False)(xp, w1t, b1, w2t, b2)

    return out[:N, :F]


# ------------------------- validation helpers -------------------------------

def _orthogonal(key, n):
    """Deterministic orthogonal [n, n] matrix (mimics nn.init.orthogonal_)."""
    a = jax.random.normal(key, (n, n), dtype=jnp.float32)
    q, r = jnp.linalg.qr(a)
    d = jnp.sign(jnp.diag(r))
    return q * d[None, :]


def _reference(x, w1, b1, w2, b2):
    """Pure-JAX reference of the ResidualStack forward (all f32)."""
    x = x.astype(jnp.float32)
    for r in range(w1.shape[0]):
        y = _shifted_softplus(x)
        y = y @ w1[r].T + b1[r]
        y = _shifted_softplus(y)
        y = y @ w2[r].T + b2[r]
        x = x + y
    return x


def _run_case(key, N, F, R, zero_bias, tile_m, weights_dtype, atol, rtol):
    kx, kb1, kb2, *kws = jax.random.split(key, 3 + 2 * R)
    x = jax.random.normal(kx, (N, F), dtype=jnp.float32)
    w1 = jnp.stack([_orthogonal(kws[2 * r], F) for r in range(R)])
    w2 = jnp.stack([_orthogonal(kws[2 * r + 1], F) for r in range(R)])
    if zero_bias:   # matches Residual.reset_parameters
        b1 = jnp.zeros((R, F), jnp.float32)
        b2 = jnp.zeros((R, F), jnp.float32)
    else:           # exercise the bias path too
        b1 = 0.1 * jax.random.normal(kb1, (R, F), dtype=jnp.float32)
        b2 = 0.1 * jax.random.normal(kb2, (R, F), dtype=jnp.float32)

    params = prepare_params(w1, b1, w2, b2, weights_dtype=weights_dtype)
    out = jax.block_until_ready(residual_stack(x, *params, tile_m=tile_m))
    ref = _reference(x, w1, b1, w2, b2)
    assert out.shape == (N, F)
    assert jnp.allclose(out, ref, atol=atol, rtol=rtol), "mismatch vs reference"


if __name__ == "__main__":
    key = jax.random.PRNGKey(0)
    k1, k2 = jax.random.split(key)

    # Small shapes consistent with the module: N=16 atoms, F=32 features, R=3.
    # f32 weight path (exact MXU math) -> tight tolerance.
    _run_case(k1, N=16, F=32, R=3, zero_bias=True, tile_m=256,
              weights_dtype=jnp.float32, atol=1e-4, rtol=1e-4)

    # Ragged N (balanced 2-step parallel grid, row padding only to 8),
    # lane-dense F, non-zero biases, bf16 resident weights (native fast MXU
    # path) -> tolerance loosened for the bf16 accuracy tradeoff.
    _run_case(k2, N=300, F=128, R=2, zero_bias=False, tile_m=256,
              weights_dtype=jnp.bfloat16, atol=5e-2, rtol=5e-2)

    print("KERNEL_OK")
</pallas_src>

<mosaic_0001>
module attributes {stable_mosaic.version = 11 : i64} {
  func.func @_residual_stack_kernel(%arg0: i32, %arg1: memref<16x128xf32, #tpu.memory_space<vmem>>, %arg2: memref<3x128x128xf32, #tpu.memory_space<vmem>>, %arg3: memref<3x128xf32, #tpu.memory_space<vmem>>, %arg4: memref<3x128x128xf32, #tpu.memory_space<vmem>>, %arg5: memref<3x128xf32, #tpu.memory_space<vmem>>, %arg6: memref<16x128xf32, #tpu.memory_space<vmem>>) attributes {dimension_semantics = [#tpu.dimension_semantics<parallel>], iteration_bounds = array<i64: 1>, scalar_prefetch = 0 : i64, scratch_operands = 0 : i64, tpu.core_type = #tpu.core_type<tc>, window_params = [{transform_indices = @transform_0, window_bounds = array<i64: 16, 128>}, {pipeline_mode = #tpu.pipeline_mode<synchronous>, transform_indices = @transform_1, window_bounds = array<i64: 3, 128, 128>}, {pipeline_mode = #tpu.pipeline_mode<synchronous>, transform_indices = @transform_2, window_bounds = array<i64: 3, 128>}, {pipeline_mode = #tpu.pipeline_mode<synchronous>, transform_indices = @transform_3, window_bounds = array<i64: 3, 128, 128>}, {pipeline_mode = #tpu.pipeline_mode<synchronous>, transform_indices = @transform_4, window_bounds = array<i64: 3, 128>}, {transform_indices = @transform_5, window_bounds = array<i64: 16, 128>}]} {
    %c0 = arith.constant 0 : index
    %c0_0 = arith.constant 0 : index
    %0 = vector.load %arg1[%c0, %c0_0] : memref<16x128xf32, #tpu.memory_space<vmem>>, vector<16x128xf32>
    %cst = arith.constant 0.000000e+00 : f32
    %1 = vector.broadcast %cst : f32 to vector<16x128xf32>
    %2 = arith.maximumf %0, %1 : vector<16x128xf32>
    %3 = vector.broadcast %cst : f32 to vector<16x128xf32>
    %4 = arith.subf %0, %3 : vector<16x128xf32>
    %5 = arith.cmpf one, %4, %4 : vector<16x128xf32>
    %6 = vector.broadcast %cst : f32 to vector<16x128xf32>
    %7 = arith.addf %0, %6 : vector<16x128xf32>
    %8 = math.absf %4 : vector<16x128xf32>
    %cst_1 = arith.constant 0.000000e+00 : f32
    %9 = vector.broadcast %cst_1 : f32 to vector<16x128xf32>
    %10 = arith.subf %9, %8 : vector<16x128xf32>
    %11 = math.exp %10 : vector<16x128xf32>
    %12 = math.log1p %11 : vector<16x128xf32>
    %13 = arith.addf %2, %12 : vector<16x128xf32>
    %14 = arith.select %5, %7, %13 : vector<16x128xi1>, vector<16x128xf32>
    %cst_2 = arith.constant 0.693147182 : f32
    %15 = vector.broadcast %cst_2 : f32 to vector<16x128xf32>
    %16 = arith.subf %14, %15 : vector<16x128xf32>
    %c0_3 = arith.constant 0 : index
    %c0_4 = arith.constant 0 : index
    %c0_5 = arith.constant 0 : index
    %17 = vector.load %arg2[%c0_3, %c0_4, %c0_5] : memref<3x128x128xf32, #tpu.memory_space<vmem>>, vector<1x128x128xf32>
    %18 = vector.shape_cast %17 : vector<1x128x128xf32> to vector<128x128xf32>
    %cst_6 = arith.constant dense<0.000000e+00> : vector<16x128xf32>
    %19 = tpu.matmul %16, %18, %cst_6 {dimension_numbers = #tpu.dot_dimension_numbers<[1], [0], [0], [1], [0, 0, 1, 1], [], []>} : vector<16x128xf32>, vector<128x128xf32>, vector<16x128xf32> -> vector<16x128xf32>
    %c0_7 = arith.constant 0 : index
    %c0_8 = arith.constant 0 : index
    %20 = vector.load %arg3[%c0_7, %c0_8] : memref<3x128xf32, #tpu.memory_space<vmem>>, vector<1x128xf32>
    %21 = vector.broadcast %20 : vector<1x128xf32> to vector<16x128xf32>
    %22 = arith.addf %19, %21 : vector<16x128xf32>
    %cst_9 = arith.constant 0.000000e+00 : f32
    %23 = vector.broadcast %cst_9 : f32 to vector<16x128xf32>
    %24 = arith.maximumf %22, %23 : vector<16x128xf32>
    %25 = vector.broadcast %cst_9 : f32 to vector<16x128xf32>
    %26 = arith.subf %22, %25 : vector<16x128xf32>
    %27 = arith.cmpf one, %26, %26 : vector<16x128xf32>
    %28 = vector.broadcast %cst_9 : f32 to vector<16x128xf32>
    %29 = arith.addf %22, %28 : vector<16x128xf32>
    %30 = math.absf %26 : vector<16x128xf32>
    %cst_10 = arith.constant 0.000000e+00 : f32
    %31 = vector.broadcast %cst_10 : f32 to vector<16x128xf32>
    %32 = arith.subf %31, %30 : vector<16x128xf32>
    %33 = math.exp %32 : vector<16x128xf32>
    %34 = math.log1p %33 : vector<16x128xf32>
    %35 = arith.addf %24, %34 : vector<16x128xf32>
    %36 = arith.select %27, %29, %35 : vector<16x128xi1>, vector<16x128xf32>
    %cst_11 = arith.constant 0.693147182 : f32
    %37 = vector.broadcast %cst_11 : f32 to vector<16x128xf32>
    %38 = arith.subf %36, %37 : vector<16x128xf32>
    %c0_12 = arith.constant 0 : index
    %c0_13 = arith.constant 0 : index
    %c0_14 = arith.constant 0 : index
    %39 = vector.load %arg4[%c0_12, %c0_13, %c0_14] : memref<3x128x128xf32, #tpu.memory_space<vmem>>, vector<1x128x128xf32>
    %40 = vector.shape_cast %39 : vector<1x128x128xf32> to vector<128x128xf32>
    %cst_15 = arith.constant dense<0.000000e+00> : vector<16x128xf32>
    %41 = tpu.matmul %38, %40, %cst_15 {dimension_numbers = #tpu.dot_dimension_numbers<[1], [0], [0], [1], [0, 0, 1, 1], [], []>} : vector<16x128xf32>, vector<128x128xf32>, vector<16x128xf32> -> vector<16x128xf32>
    %c0_16 = arith.constant 0 : index
    %c0_17 = arith.constant 0 : index
    %42 = vector.load %arg5[%c0_16, %c0_17] : memref<3x128xf32, #tpu.memory_space<vmem>>, vector<1x128xf32>
    %43 = vector.broadcast %42 : vector<1x128xf32> to vector<16x128xf32>
    %44 = arith.addf %41, %43 : vector<16x128xf32>
    %45 = arith.addf %0, %44 : vector<16x128xf32>
    %cst_18 = arith.constant 0.000000e+00 : f32
    %46 = vector.broadcast %cst_18 : f32 to vector<16x128xf32>
    %47 = arith.maximumf %45, %46 : vector<16x128xf32>
    %48 = vector.broadcast %cst_18 : f32 to vector<16x128xf32>
    %49 = arith.subf %45, %48 : vector<16x128xf32>
    %50 = arith.cmpf one, %49, %49 : vector<16x128xf32>
    %51 = vector.broadcast %cst_18 : f32 to vector<16x128xf32>
    %52 = arith.addf %45, %51 : vector<16x128xf32>
    %53 = math.absf %49 : vector<16x128xf32>
    %cst_19 = arith.constant 0.000000e+00 : f32
    %54 = vector.broadcast %cst_19 : f32 to vector<16x128xf32>
    %55 = arith.subf %54, %53 : vector<16x128xf32>
    %56 = math.exp %55 : vector<16x128xf32>
    %57 = math.log1p %56 : vector<16x128xf32>
    %58 = arith.addf %47, %57 : vector<16x128xf32>
    %59 = arith.select %50, %52, %58 : vector<16x128xi1>, vector<16x128xf32>
    %cst_20 = arith.constant 0.693147182 : f32
    %60 = vector.broadcast %cst_20 : f32 to vector<16x128xf32>
    %61 = arith.subf %59, %60 : vector<16x128xf32>
    %c1 = arith.constant 1 : index
    %c0_21 = arith.constant 0 : index
    %c0_22 = arith.constant 0 : index
    %62 = vector.load %arg2[%c1, %c0_21, %c0_22] : memref<3x128x128xf32, #tpu.memory_space<vmem>>, vector<1x128x128xf32>
    %63 = vector.shape_cast %62 : vector<1x128x128xf32> to vector<128x128xf32>
    %cst_23 = arith.constant dense<0.000000e+00> : vector<16x128xf32>
    %64 = tpu.matmul %61, %63, %cst_23 {dimension_numbers = #tpu.dot_dimension_numbers<[1], [0], [0], [1], [0, 0, 1, 1], [], []>} : vector<16x128xf32>, vector<128x128xf32>, vector<16x128xf32> -> vector<16x128xf32>
    %c1_24 = arith.constant 1 : index
    %c0_25 = arith.constant 0 : index
    %65 = vector.load %arg3[%c1_24, %c0_25] : memref<3x128xf32, #tpu.memory_space<vmem>>, vector<1x128xf32>
    %66 = vector.broadcast %65 : vector<1x128xf32> to vector<16x128xf32>
    %67 = arith.addf %64, %66 : vector<16x128xf32>
    %cst_26 = arith.constant 0.000000e+00 : f32
    %68 = vector.broadcast %cst_26 : f32 to vector<16x128xf32>
    %69 = arith.maximumf %67, %68 : vector<16x128xf32>
    %70 = vector.broadcast %cst_26 : f32 to vector<16x128xf32>
    %71 = arith.subf %67, %70 : vector<16x128xf32>
    %72 = arith.cmpf one, %71, %71 : vector<16x128xf32>
    %73 = vector.broadcast %cst_26 : f32 to vector<16x128xf32>
    %74 = arith.addf %67, %73 : vector<16x128xf32>
    %75 = math.absf %71 : vector<16x128xf32>
    %cst_27 = arith.constant 0.000000e+00 : f32
    %76 = vector.broadcast %cst_27 : f32 to vector<16x128xf32>
    %77 = arith.subf %76, %75 : vector<16x128xf32>
    %78 = math.exp %77 : vector<16x128xf32>
    %79 = math.log1p %78 : vector<16x128xf32>
    %80 = arith.addf %69, %79 : vector<16x128xf32>
    %81 = arith.select %72, %74, %80 : vector<16x128xi1>, vector<16x128xf32>
    %cst_28 = arith.constant 0.693147182 : f32
    %82 = vector.broadcast %cst_28 : f32 to vector<16x128xf32>
    %83 = arith.subf %81, %82 : vector<16x128xf32>
    %c1_29 = arith.constant 1 : index
    %c0_30 = arith.constant 0 : index
    %c0_31 = arith.constant 0 : index
    %84 = vector.load %arg4[%c1_29, %c0_30, %c0_31] : memref<3x128x128xf32, #tpu.memory_space<vmem>>, vector<1x128x128xf32>
    %85 = vector.shape_cast %84 : vector<1x128x128xf32> to vector<128x128xf32>
    %cst_32 = arith.constant dense<0.000000e+00> : vector<16x128xf32>
    %86 = tpu.matmul %83, %85, %cst_32 {dimension_numbers = #tpu.dot_dimension_numbers<[1], [0], [0], [1], [0, 0, 1, 1], [], []>} : vector<16x128xf32>, vector<128x128xf32>, vector<16x128xf32> -> vector<16x128xf32>
    %c1_33 = arith.constant 1 : index
    %c0_34 = arith.constant 0 : index
    %87 = vector.load %arg5[%c1_33, %c0_34] : memref<3x128xf32, #tpu.memory_space<vmem>>, vector<1x128xf32>
    %88 = vector.broadcast %87 : vector<1x128xf32> to vector<16x128xf32>
    %89 = arith.addf %86, %88 : vector<16x128xf32>
    %90 = arith.addf %45, %89 : vector<16x128xf32>
    %cst_35 = arith.constant 0.000000e+00 : f32
    %91 = vector.broadcast %cst_35 : f32 to vector<16x128xf32>
    %92 = arith.maximumf %90, %91 : vector<16x128xf32>
    %93 = vector.broadcast %cst_35 : f32 to vector<16x128xf32>
    %94 = arith.subf %90, %93 : vector<16x128xf32>
    %95 = arith.cmpf one, %94, %94 : vector<16x128xf32>
    %96 = vector.broadcast %cst_35 : f32 to vector<16x128xf32>
    %97 = arith.addf %90, %96 : vector<16x128xf32>
    %98 = math.absf %94 : vector<16x128xf32>
    %cst_36 = arith.constant 0.000000e+00 : f32
    %99 = vector.broadcast %cst_36 : f32 to vector<16x128xf32>
    %100 = arith.subf %99, %98 : vector<16x128xf32>
    %101 = math.exp %100 : vector<16x128xf32>
    %102 = math.log1p %101 : vector<16x128xf32>
    %103 = arith.addf %92, %102 : vector<16x128xf32>
    %104 = arith.select %95, %97, %103 : vector<16x128xi1>, vector<16x128xf32>
    %cst_37 = arith.constant 0.693147182 : f32
    %105 = vector.broadcast %cst_37 : f32 to vector<16x128xf32>
    %106 = arith.subf %104, %105 : vector<16x128xf32>
    %c2 = arith.constant 2 : index
    %c0_38 = arith.constant 0 : index
    %c0_39 = arith.constant 0 : index
    %107 = vector.load %arg2[%c2, %c0_38, %c0_39] : memref<3x128x128xf32, #tpu.memory_space<vmem>>, vector<1x128x128xf32>
    %108 = vector.shape_cast %107 : vector<1x128x128xf32> to vector<128x128xf32>
    %cst_40 = arith.constant dense<0.000000e+00> : vector<16x128xf32>
    %109 = tpu.matmul %106, %108, %cst_40 {dimension_numbers = #tpu.dot_dimension_numbers<[1], [0], [0], [1], [0, 0, 1, 1], [], []>} : vector<16x128xf32>, vector<128x128xf32>, vector<16x128xf32> -> vector<16x128xf32>
    %c2_41 = arith.constant 2 : index
    %c0_42 = arith.constant 0 : index
    %110 = vector.load %arg3[%c2_41, %c0_42] : memref<3x128xf32, #tpu.memory_space<vmem>>, vector<1x128xf32>
    %111 = vector.broadcast %110 : vector<1x128xf32> to vector<16x128xf32>
    %112 = arith.addf %109, %111 : vector<16x128xf32>
    %cst_43 = arith.constant 0.000000e+00 : f32
    %113 = vector.broadcast %cst_43 : f32 to vector<16x128xf32>
    %114 = arith.maximumf %112, %113 : vector<16x128xf32>
    %115 = vector.broadcast %cst_43 : f32 to vector<16x128xf32>
    %116 = arith.subf %112, %115 : vector<16x128xf32>
    %117 = arith.cmpf one, %116, %116 : vector<16x128xf32>
    %118 = vector.broadcast %cst_43 : f32 to vector<16x128xf32>
    %119 = arith.addf %112, %118 : vector<16x128xf32>
    %120 = math.absf %116 : vector<16x128xf32>
    %cst_44 = arith.constant 0.000000e+00 : f32
    %121 = vector.broadcast %cst_44 : f32 to vector<16x128xf32>
    %122 = arith.subf %121, %120 : vector<16x128xf32>
    %123 = math.exp %122 : vector<16x128xf32>
    %124 = math.log1p %123 : vector<16x128xf32>
    %125 = arith.addf %114, %124 : vector<16x128xf32>
    %126 = arith.select %117, %119, %125 : vector<16x128xi1>, vector<16x128xf32>
    %cst_45 = arith.constant 0.693147182 : f32
    %127 = vector.broadcast %cst_45 : f32 to vector<16x128xf32>
    %128 = arith.subf %126, %127 : vector<16x128xf32>
    %c2_46 = arith.constant 2 : index
    %c0_47 = arith.constant 0 : index
    %c0_48 = arith.constant 0 : index
    %129 = vector.load %arg4[%c2_46, %c0_47, %c0_48] : memref<3x128x128xf32, #tpu.memory_space<vmem>>, vector<1x128x128xf32>
    %130 = vector.shape_cast %129 : vector<1x128x128xf32> to vector<128x128xf32>
    %cst_49 = arith.constant dense<0.000000e+00> : vector<16x128xf32>
    %131 = tpu.matmul %128, %130, %cst_49 {dimension_numbers = #tpu.dot_dimension_numbers<[1], [0], [0], [1], [0, 0, 1, 1], [], []>} : vector<16x128xf32>, vector<128x128xf32>, vector<16x128xf32> -> vector<16x128xf32>
    %c2_50 = arith.constant 2 : index
    %c0_51 = arith.constant 0 : index
    %132 = vector.load %arg5[%c2_50, %c0_51] : memref<3x128xf32, #tpu.memory_space<vmem>>, vector<1x128xf32>
    %133 = vector.broadcast %132 : vector<1x128xf32> to vector<16x128xf32>
    %134 = arith.addf %131, %133 : vector<16x128xf32>
    %135 = arith.addf %90, %134 : vector<16x128xf32>
    %c0_52 = arith.constant 0 : index
    %c0_53 = arith.constant 0 : index
    %136 = vector.load %arg6[%c0_52, %c0_53] : memref<16x128xf32, #tpu.memory_space<vmem>>, vector<16x128xf32>
    tpu.vector_store %arg6[%c0_52, %c0_53], %135 {strides = array<i32>} : memref<16x128xf32, #tpu.memory_space<vmem>>, vector<16x128xf32>,
    return
  }
  func.func @transform_0(%arg0: i32) -> (i32, i32) {
    %c0_i32 = arith.constant 0 : i32
    %c0_i32_0 = arith.constant 0 : i32
    return %arg0, %c0_i32 : i32, i32
  }
  func.func @transform_1(%arg0: i32) -> (i32, i32, i32) {
    %c0_i32 = arith.constant 0 : i32
    %c0_i32_0 = arith.constant 0 : i32
    %c0_i32_1 = arith.constant 0 : i32
    %c0_i32_2 = arith.constant 0 : i32
    return %c0_i32, %c0_i32_0, %c0_i32_1 : i32, i32, i32
  }
  func.func @transform_2(%arg0: i32) -> (i32, i32) {
    %c0_i32 = arith.constant 0 : i32
    %c0_i32_0 = arith.constant 0 : i32
    %c0_i32_1 = arith.constant 0 : i32
    return %c0_i32, %c0_i32_0 : i32, i32
  }
  func.func @transform_3(%arg0: i32) -> (i32, i32, i32) {
    %c0_i32 = arith.constant 0 : i32
    %c0_i32_0 = arith.constant 0 : i32
    %c0_i32_1 = arith.constant 0 : i32
    %c0_i32_2 = arith.constant 0 : i32
    return %c0_i32, %c0_i32_0, %c0_i32_1 : i32, i32, i32
  }
  func.func @transform_4(%arg0: i32) -> (i32, i32) {
    %c0_i32 = arith.constant 0 : i32
    %c0_i32_0 = arith.constant 0 : i32
    %c0_i32_1 = arith.constant 0 : i32
    return %c0_i32, %c0_i32_0 : i32, i32
  }
  func.func @transform_5(%arg0: i32) -> (i32, i32) {
    %c0_i32 = arith.constant 0 : i32
    %c0_i32_0 = arith.constant 0 : i32
    return %arg0, %c0_i32 : i32, i32
  }
}

module attributes {stable_mosaic.version = 11 : i64} {
  func.func @_residual_stack_kernel(%arg0: i32, %arg1: memref<16x128xf32, #tpu.memory_space<vmem>>, %arg2: memref<3x128x128xf32, #tpu.memory_space<vmem>>, %arg3: memref<3x128xf32, #tpu.memory_space<vmem>>, %arg4: memref<3x128x128xf32, #tpu.memory_space<vmem>>, %arg5: memref<3x128xf32, #tpu.memory_space<vmem>>, %arg6: memref<16x128xf32, #tpu.memory_space<vmem>>) attributes {dimension_semantics = [#tpu.dimension_semantics<parallel>], iteration_bounds = array<i64: 1>, scalar_prefetch = 0 : i64, scratch_operands = 0 : i64, tpu.core_type = #tpu.core_type<tc>, window_params = [{transform_indices = @transform_0, window_bounds = array<i64: 16, 128>}, {pipeline_mode = #tpu.pipeline_mode<synchronous>, transform_indices = @transform_1, window_bounds = array<i64: 3, 128, 128>}, {pipeline_mode = #tpu.pipeline_mode<synchronous>, transform_indices = @transform_2, window_bounds = array<i64: 3, 128>}, {pipeline_mode = #tpu.pipeline_mode<synchronous>, transform_indices = @transform_3, window_bounds = array<i64: 3, 128, 128>}, {pipeline_mode = #tpu.pipeline_mode<synchronous>, transform_indices = @transform_4, window_bounds = array<i64: 3, 128>}, {transform_indices = @transform_5, window_bounds = array<i64: 16, 128>}]} {
    %c0 = arith.constant 0 : index
    %c0_0 = arith.constant 0 : index
    %0 = vector.load %arg1[%c0, %c0_0] : memref<16x128xf32, #tpu.memory_space<vmem>>, vector<16x128xf32>
    %cst = arith.constant 0.000000e+00 : f32
    %1 = vector.broadcast %cst : f32 to vector<16x128xf32>
    %2 = arith.maximumf %0, %1 : vector<16x128xf32>
    %3 = vector.broadcast %cst : f32 to vector<16x128xf32>
    %4 = arith.subf %0, %3 : vector<16x128xf32>
    %5 = arith.cmpf one, %4, %4 : vector<16x128xf32>
    %6 = vector.broadcast %cst : f32 to vector<16x128xf32>
    %7 = arith.addf %0, %6 : vector<16x128xf32>
    %8 = math.absf %4 : vector<16x128xf32>
    %cst_1 = arith.constant 0.000000e+00 : f32
    %9 = vector.broadcast %cst_1 : f32 to vector<16x128xf32>
    %10 = arith.subf %9, %8 : vector<16x128xf32>
    %11 = math.exp %10 : vector<16x128xf32>
    %12 = math.log1p %11 : vector<16x128xf32>
    %13 = arith.addf %2, %12 : vector<16x128xf32>
    %14 = arith.select %5, %7, %13 : vector<16x128xi1>, vector<16x128xf32>
    %cst_2 = arith.constant 0.693147182 : f32
    %15 = vector.broadcast %cst_2 : f32 to vector<16x128xf32>
    %16 = arith.subf %14, %15 : vector<16x128xf32>
    %c0_3 = arith.constant 0 : index
    %c0_4 = arith.constant 0 : index
    %c0_5 = arith.constant 0 : index
    %17 = vector.load %arg2[%c0_3, %c0_4, %c0_5] : memref<3x128x128xf32, #tpu.memory_space<vmem>>, vector<1x128x128xf32>
    %18 = vector.shape_cast %17 : vector<1x128x128xf32> to vector<128x128xf32>
    %cst_6 = arith.constant dense<0.000000e+00> : vector<16x128xf32>
    %19 = tpu.matmul %16, %18, %cst_6 {dimension_numbers = #tpu.dot_dimension_numbers<[1], [0], [0], [1], [0, 0, 1, 1], [], []>} : vector<16x128xf32>, vector<128x128xf32>, vector<16x128xf32> -> vector<16x128xf32>
    %c0_7 = arith.constant 0 : index
    %c0_8 = arith.constant 0 : index
    %20 = vector.load %arg3[%c0_7, %c0_8] : memref<3x128xf32, #tpu.memory_space<vmem>>, vector<1x128xf32>
    %21 = vector.broadcast %20 : vector<1x128xf32> to vector<16x128xf32>
    %22 = arith.addf %19, %21 : vector<16x128xf32>
    %cst_9 = arith.constant 0.000000e+00 : f32
    %23 = vector.broadcast %cst_9 : f32 to vector<16x128xf32>
    %24 = arith.maximumf %22, %23 : vector<16x128xf32>
    %25 = vector.broadcast %cst_9 : f32 to vector<16x128xf32>
    %26 = arith.subf %22, %25 : vector<16x128xf32>
    %27 = arith.cmpf one, %26, %26 : vector<16x128xf32>
    %28 = vector.broadcast %cst_9 : f32 to vector<16x128xf32>
    %29 = arith.addf %22, %28 : vector<16x128xf32>
    %30 = math.absf %26 : vector<16x128xf32>
    %cst_10 = arith.constant 0.000000e+00 : f32
    %31 = vector.broadcast %cst_10 : f32 to vector<16x128xf32>
    %32 = arith.subf %31, %30 : vector<16x128xf32>
    %33 = math.exp %32 : vector<16x128xf32>
    %34 = math.log1p %33 : vector<16x128xf32>
    %35 = arith.addf %24, %34 : vector<16x128xf32>
    %36 = arith.select %27, %29, %35 : vector<16x128xi1>, vector<16x128xf32>
    %cst_11 = arith.constant 0.693147182 : f32
    %37 = vector.broadcast %cst_11 : f32 to vector<16x128xf32>
    %38 = arith.subf %36, %37 : vector<16x128xf32>
    %c0_12 = arith.constant 0 : index
    %c0_13 = arith.constant 0 : index
    %c0_14 = arith.constant 0 : index
    %39 = vector.load %arg4[%c0_12, %c0_13, %c0_14] : memref<3x128x128xf32, #tpu.memory_space<vmem>>, vector<1x128x128xf32>
    %40 = vector.shape_cast %39 : vector<1x128x128xf32> to vector<128x128xf32>
    %cst_15 = arith.constant dense<0.000000e+00> : vector<16x128xf32>
    %41 = tpu.matmul %38, %40, %cst_15 {dimension_numbers = #tpu.dot_dimension_numbers<[1], [0], [0], [1], [0, 0, 1, 1], [], []>} : vector<16x128xf32>, vector<128x128xf32>, vector<16x128xf32> -> vector<16x128xf32>
    %c0_16 = arith.constant 0 : index
    %c0_17 = arith.constant 0 : index
    %42 = vector.load %arg5[%c0_16, %c0_17] : memref<3x128xf32, #tpu.memory_space<vmem>>, vector<1x128xf32>
    %43 = vector.broadcast %42 : vector<1x128xf32> to vector<16x128xf32>
    %44 = arith.addf %41, %43 : vector<16x128xf32>
    %45 = arith.addf %0, %44 : vector<16x128xf32>
    %cst_18 = arith.constant 0.000000e+00 : f32
    %46 = vector.broadcast %cst_18 : f32 to vector<16x128xf32>
    %47 = arith.maximumf %45, %46 : vector<16x128xf32>
    %48 = vector.broadcast %cst_18 : f32 to vector<16x128xf32>
    %49 = arith.subf %45, %48 : vector<16x128xf32>
    %50 = arith.cmpf one, %49, %49 : vector<16x128xf32>
    %51 = vector.broadcast %cst_18 : f32 to vector<16x128xf32>
    %52 = arith.addf %45, %51 : vector<16x128xf32>
    %53 = math.absf %49 : vector<16x128xf32>
    %cst_19 = arith.constant 0.000000e+00 : f32
    %54 = vector.broadcast %cst_19 : f32 to vector<16x128xf32>
    %55 = arith.subf %54, %53 : vector<16x128xf32>
    %56 = math.exp %55 : vector<16x128xf32>
    %57 = math.log1p %56 : vector<16x128xf32>
    %58 = arith.addf %47, %57 : vector<16x128xf32>
    %59 = arith.select %50, %52, %58 : vector<16x128xi1>, vector<16x128xf32>
    %cst_20 = arith.constant 0.693147182 : f32
    %60 = vector.broadcast %cst_20 : f32 to vector<16x128xf32>
    %61 = arith.subf %59, %60 : vector<16x128xf32>
    %c1 = arith.constant 1 : index
    %c0_21 = arith.constant 0 : index
    %c0_22 = arith.constant 0 : index
    %62 = vector.load %arg2[%c1, %c0_21, %c0_22] : memref<3x128x128xf32, #tpu.memory_space<vmem>>, vector<1x128x128xf32>
    %63 = vector.shape_cast %62 : vector<1x128x128xf32> to vector<128x128xf32>
    %cst_23 = arith.constant dense<0.000000e+00> : vector<16x128xf32>
    %64 = tpu.matmul %61, %63, %cst_23 {dimension_numbers = #tpu.dot_dimension_numbers<[1], [0], [0], [1], [0, 0, 1, 1], [], []>} : vector<16x128xf32>, vector<128x128xf32>, vector<16x128xf32> -> vector<16x128xf32>
    %c1_24 = arith.constant 1 : index
    %c0_25 = arith.constant 0 : index
    %65 = vector.load %arg3[%c1_24, %c0_25] : memref<3x128xf32, #tpu.memory_space<vmem>>, vector<1x128xf32>
    %66 = vector.broadcast %65 : vector<1x128xf32> to vector<16x128xf32>
    %67 = arith.addf %64, %66 : vector<16x128xf32>
    %cst_26 = arith.constant 0.000000e+00 : f32
    %68 = vector.broadcast %cst_26 : f32 to vector<16x128xf32>
    %69 = arith.maximumf %67, %68 : vector<16x128xf32>
    %70 = vector.broadcast %cst_26 : f32 to vector<16x128xf32>
    %71 = arith.subf %67, %70 : vector<16x128xf32>
    %72 = arith.cmpf one, %71, %71 : vector<16x128xf32>
    %73 = vector.broadcast %cst_26 : f32 to vector<16x128xf32>
    %74 = arith.addf %67, %73 : vector<16x128xf32>
    %75 = math.absf %71 : vector<16x128xf32>
    %cst_27 = arith.constant 0.000000e+00 : f32
    %76 = vector.broadcast %cst_27 : f32 to vector<16x128xf32>
    %77 = arith.subf %76, %75 : vector<16x128xf32>
    %78 = math.exp %77 : vector<16x128xf32>
    %79 = math.log1p %78 : vector<16x128xf32>
    %80 = arith.addf %69, %79 : vector<16x128xf32>
    %81 = arith.select %72, %74, %80 : vector<16x128xi1>, vector<16x128xf32>
    %cst_28 = arith.constant 0.693147182 : f32
    %82 = vector.broadcast %cst_28 : f32 to vector<16x128xf32>
    %83 = arith.subf %81, %82 : vector<16x128xf32>
    %c1_29 = arith.constant 1 : index
    %c0_30 = arith.constant 0 : index
    %c0_31 = arith.constant 0 : index
    %84 = vector.load %arg4[%c1_29, %c0_30, %c0_31] : memref<3x128x128xf32, #tpu.memory_space<vmem>>, vector<1x128x128xf32>
    %85 = vector.shape_cast %84 : vector<1x128x128xf32> to vector<128x128xf32>
    %cst_32 = arith.constant dense<0.000000e+00> : vector<16x128xf32>
    %86 = tpu.matmul %83, %85, %cst_32 {dimension_numbers = #tpu.dot_dimension_numbers<[1], [0], [0], [1], [0, 0, 1, 1], [], []>} : vector<16x128xf32>, vector<128x128xf32>, vector<16x128xf32> -> vector<16x128xf32>
    %c1_33 = arith.constant 1 : index
    %c0_34 = arith.constant 0 : index
    %87 = vector.load %arg5[%c1_33, %c0_34] : memref<3x128xf32, #tpu.memory_space<vmem>>, vector<1x128xf32>
    %88 = vector.broadcast %87 : vector<1x128xf32> to vector<16x128xf32>
    %89 = arith.addf %86, %88 : vector<16x128xf32>
    %90 = arith.addf %45, %89 : vector<16x128xf32>
    %cst_35 = arith.constant 0.000000e+00 : f32
    %91 = vector.broadcast %cst_35 : f32 to vector<16x128xf32>
    %92 = arith.maximumf %90, %91 : vector<16x128xf32>
    %93 = vector.broadcast %cst_35 : f32 to vector<16x128xf32>
    %94 = arith.subf %90, %93 : vector<16x128xf32>
    %95 = arith.cmpf one, %94, %94 : vector<16x128xf32>
    %96 = vector.broadcast %cst_35 : f32 to vector<16x128xf32>
    %97 = arith.addf %90, %96 : vector<16x128xf32>
    %98 = math.absf %94 : vector<16x128xf32>
    %cst_36 = arith.constant 0.000000e+00 : f32
    %99 = vector.broadcast %cst_36 : f32 to vector<16x128xf32>
    %100 = arith.subf %99, %98 : vector<16x128xf32>
    %101 = math.exp %100 : vector<16x128xf32>
    %102 = math.log1p %101 : vector<16x128xf32>
    %103 = arith.addf %92, %102 : vector<16x128xf32>
    %104 = arith.select %95, %97, %103 : vector<16x128xi1>, vector<16x128xf32>
    %cst_37 = arith.constant 0.693147182 : f32
    %105 = vector.broadcast %cst_37 : f32 to vector<16x128xf32>
    %106 = arith.subf %104, %105 : vector<16x128xf32>
    %c2 = arith.constant 2 : index
    %c0_38 = arith.constant 0 : index
    %c0_39 = arith.constant 0 : index
    %107 = vector.load %arg2[%c2, %c0_38, %c0_39] : memref<3x128x128xf32, #tpu.memory_space<vmem>>, vector<1x128x128xf32>
    %108 = vector.shape_cast %107 : vector<1x128x128xf32> to vector<128x128xf32>
    %cst_40 = arith.constant dense<0.000000e+00> : vector<16x128xf32>
    %109 = tpu.matmul %106, %108, %cst_40 {dimension_numbers = #tpu.dot_dimension_numbers<[1], [0], [0], [1], [0, 0, 1, 1], [], []>} : vector<16x128xf32>, vector<128x128xf32>, vector<16x128xf32> -> vector<16x128xf32>
    %c2_41 = arith.constant 2 : index
    %c0_42 = arith.constant 0 : index
    %110 = vector.load %arg3[%c2_41, %c0_42] : memref<3x128xf32, #tpu.memory_space<vmem>>, vector<1x128xf32>
    %111 = vector.broadcast %110 : vector<1x128xf32> to vector<16x128xf32>
    %112 = arith.addf %109, %111 : vector<16x128xf32>
    %cst_43 = arith.constant 0.000000e+00 : f32
    %113 = vector.broadcast %cst_43 : f32 to vector<16x128xf32>
    %114 = arith.maximumf %112, %113 : vector<16x128xf32>
    %115 = vector.broadcast %cst_43 : f32 to vector<16x128xf32>
    %116 = arith.subf %112, %115 : vector<16x128xf32>
    %117 = arith.cmpf one, %116, %116 : vector<16x128xf32>
    %118 = vector.broadcast %cst_43 : f32 to vector<16x128xf32>
    %119 = arith.addf %112, %118 : vector<16x128xf32>
    %120 = math.absf %116 : vector<16x128xf32>
    %cst_44 = arith.constant 0.000000e+00 : f32
    %121 = vector.broadcast %cst_44 : f32 to vector<16x128xf32>
    %122 = arith.subf %121, %120 : vector<16x128xf32>
    %123 = math.exp %122 : vector<16x128xf32>
    %124 = math.log1p %123 : vector<16x128xf32>
    %125 = arith.addf %114, %124 : vector<16x128xf32>
    %126 = arith.select %117, %119, %125 : vector<16x128xi1>, vector<16x128xf32>
    %cst_45 = arith.constant 0.693147182 : f32
    %127 = vector.broadcast %cst_45 : f32 to vector<16x128xf32>
    %128 = arith.subf %126, %127 : vector<16x128xf32>
    %c2_46 = arith.constant 2 : index
    %c0_47 = arith.constant 0 : index
    %c0_48 = arith.constant 0 : index
    %129 = vector.load %arg4[%c2_46, %c0_47, %c0_48] : memref<3x128x128xf32, #tpu.memory_space<vmem>>, vector<1x128x128xf32>
    %130 = vector.shape_cast %129 : vector<1x128x128xf32> to vector<128x128xf32>
    %cst_49 = arith.constant dense<0.000000e+00> : vector<16x128xf32>
    %131 = tpu.matmul %128, %130, %cst_49 {dimension_numbers = #tpu.dot_dimension_numbers<[1], [0], [0], [1], [0, 0, 1, 1], [], []>} : vector<16x128xf32>, vector<128x128xf32>, vector<16x128xf32> -> vector<16x128xf32>
    %c2_50 = arith.constant 2 : index
    %c0_51 = arith.constant 0 : index
    %132 = vector.load %arg5[%c2_50, %c0_51] : memref<3x128xf32, #tpu.memory_space<vmem>>, vector<1x128xf32>
    %133 = vector.broadcast %132 : vector<1x128xf32> to vector<16x128xf32>
    %134 = arith.addf %131, %133 : vector<16x128xf32>
    %135 = arith.addf %90, %134 : vector<16x128xf32>
    %c0_52 = arith.constant 0 : index
    %c0_53 = arith.constant 0 : index
    %136 = vector.load %arg6[%c0_52, %c0_53] : memref<16x128xf32, #tpu.memory_space<vmem>>, vector<16x128xf32>
    tpu.vector_store %arg6[%c0_52, %c0_53], %135 {strides = array<i32>} : memref<16x128xf32, #tpu.memory_space<vmem>>, vector<16x128xf32>,
    return
  }
  func.func @transform_0(%arg0: i32) -> (i32, i32) {
    %c0_i32 = arith.constant 0 : i32
    %c0_i32_0 = arith.constant 0 : i32
    return %arg0, %c0_i32 : i32, i32
  }
  func.func @transform_1(%arg0: i32) -> (i32, i32, i32) {
    %c0_i32 = arith.constant 0 : i32
    %c0_i32_0 = arith.constant 0 : i32
    %c0_i32_1 = arith.constant 0 : i32
    %c0_i32_2 = arith.constant 0 : i32
    return %c0_i32, %c0_i32_0, %c0_i32_1 : i32, i32, i32
  }
  func.func @transform_2(%arg0: i32) -> (i32, i32) {
    %c0_i32 = arith.constant 0 : i32
    %c0_i32_0 = arith.constant 0 : i32
    %c0_i32_1 = arith.constant 0 : i32
    return %c0_i32, %c0_i32_0 : i32, i32
  }
  func.func @transform_3(%arg0: i32) -> (i32, i32, i32) {
    %c0_i32 = arith.constant 0 : i32
    %c0_i32_0 = arith.constant 0 : i32
    %c0_i32_1 = arith.constant 0 : i32
    %c0_i32_2 = arith.constant 0 : i32
    return %c0_i32, %c0_i32_0, %c0_i32_1 : i32, i32, i32
  }
  func.func @transform_4(%arg0: i32) -> (i32, i32) {
    %c0_i32 = arith.constant 0 : i32
    %c0_i32_0 = arith.constant 0 : i32
    %c0_i32_1 = arith.constant 0 : i32
    return %c0_i32, %c0_i32_0 : i32, i32
  }
  func.func @transform_5(%arg0: i32) -> (i32, i32) {
    %c0_i32 = arith.constant 0 : i32
    %c0_i32_0 = arith.constant 0 : i32
    return %arg0, %c0_i32 : i32, i32
  }
}

</mosaic_0001>

<bundles_post_ra>
// kernel: tpu_custom_call.1
= control target key start
LH: loop header
LB: loop body
LE: loop exit
PB: predicated region body
PF: predicated region fallthrough
CT: control target
= control target key end

     0   :  { %10 = vsyncpa [#allocation3], 0  ;;  %s1531_s0 = inlined_call_operand.hbm [shape: f32[16,128], index: 0, kind: input, shape index: {}]   ;;  %s1532_s1 = inlined_call_operand.hbm [shape: f32[3,128,128], index: 1, kind: input, shape index: {}]   ;;  %s1533_s2 = inlined_call_operand.hbm [shape: f32[3,128], index: 2, kind: input, shape index: {}]   ;;  %s1534_s3 = inlined_call_operand.hbm [shape: f32[3,128,128], index: 3, kind: input, shape index: {}]   ;;  %s1535_s4 = inlined_call_operand.vmem [shape: f32[3,128], index: 4, kind: input, shape index: {}]   ;;  %s1536_s5 = inlined_call_operand.hbm [shape: f32[16,128], index: 5, kind: output, shape index: {}]  }
   0x1   :  { %11 = vsyncpa [#allocation6], 0 }
   0x2   :  { %12 = vsyncpa [#allocation9], 0 }
   0x3   :  { %13 = vsyncpa [#allocation4], 0  ;;  %s1410_s18 = smov [#allocation5]   ;;  %s1411_s20 = smov [#allocation2]  }
   0x4   :  { %s31_s19 = sshll.u32 %s1410_s18, 4  ;;  %s19_s21 = sshll.u32 %s1411_s20, 4  ;;  %s32_s19 = int_to_ptr.vmem [resolvable:$true] %s31_s19  ;;  %s20_s21 = int_to_ptr.vmem [resolvable:$true] %s19_s21 }
   0x5   :  { %s1310_s22 = scalar_lea.vmem %s32_s19, 6144  ;;  %p1315_p1 = scmp.lt.s32.totalorder %s32_s19, %s32_s19 }
   0x6   :  { %p1311_p0 = scmp.ne.s32.totalorder %s32_s19, %s1310_s22  ;;  %p1316_p2 = scmp.lt.s32.totalorder %s1310_s22, %s1310_s22 }
   0x8   :  { %p1317_p3 = por %p1316_p2, %p1315_p1 }
   0xa   :  { %p1318_p4 = pnand %p1317_p3, %p1311_p0 }
   0xc   :  { %1321 = shalt.err (!%p1318_p4)
}
   0xd   :  { %s1412_s23 = smov 128   ;;  %s1413_s24 = smov 8  }
   0xe   :  { %37 = dma.hbm_to_vmem [thread:$0]  %s1532_s1, 6144, %s32_s19, [#allocation6], %s1412_s23, %s1412_s23, %s1413_s24  }
   0xf   :  { %s1330_s27 = scalar_lea.vmem %s20_s21, 256  ;;  %p1335_p6 = scmp.lt.s32.totalorder %s20_s21, %s20_s21 }
  0x10   :  { %p1331_p5 = scmp.ne.s32.totalorder %s20_s21, %s1330_s27  ;;  %p1336_p7 = scmp.lt.s32.totalorder %s1330_s27, %s1330_s27 }
  0x12   :  { %p1337_p8 = por %p1336_p7, %p1335_p6 }
  0x14   :  { %p1338_p9 = pnand %p1337_p8, %p1331_p5 }
  0x16   :  { %1341 = shalt.err (!%p1338_p9)
}
  0x17   :  { %25 = dma.hbm_to_vmem [thread:$0]  %s1531_s0, 256, %s20_s21, [#allocation3], %s1412_s23, %s1412_s23, %s1413_s24  }
  0x18   :  { %s1414_s30 = smov [#allocation7]   ;;  %s1415_s7 = smov [#allocation8]  }
  0x19   :  { %s44_s6 = sshll.u32 %s1414_s30, 4  ;;  %s53_s8 = sshll.u32 %s1415_s7, 4  ;;  %s45_s6 = int_to_ptr.vmem [resolvable:$true] %s44_s6  ;;  %s54_s8 = int_to_ptr.vmem [resolvable:$true] %s53_s8 }
  0x1a   :  { %s1350_s1 = scalar_lea.vmem %s45_s6, 64  ;;  %p1355_p11 = scmp.lt.s32.totalorder %s45_s6, %s45_s6 }
  0x1b   :  { %p1351_p10 = scmp.ne.s32.totalorder %s45_s6, %s1350_s1  ;;  %p1356_p12 = scmp.lt.s32.totalorder %s1350_s1, %s1350_s1 }
  0x1d   :  { %p1357_p13 = por %p1356_p12, %p1355_p11 }
  0x1f   :  { %p1358_p0 = pnand %p1357_p13, %p1351_p10 }
  0x21   :  { %1361 = shalt.err (!%p1358_p0)
}
  0x22   :  { %47 = dma.hbm_to_vmem [thread:$0]  %s1533_s2, 64, %s45_s6, [#allocation6]  }
  0x23   :  { %s1370_s11 = scalar_lea.vmem %s54_s8, 6144  ;;  %p1375_p2 = scmp.lt.s32.totalorder %s54_s8, %s54_s8 }
  0x24   :  { %p1371_p1 = scmp.ne.s32.totalorder %s54_s8, %s1370_s11  ;;  %p1376_p3 = scmp.lt.s32.totalorder %s1370_s11, %s1370_s11 }
  0x26   :  { %p1377_p4 = por %p1376_p3, %p1375_p2 }
  0x28   :  { %p1378_p5 = pnand %p1377_p4, %p1371_p1 }
  0x2a   :  { %1381 = shalt.err (!%p1378_p5)
}
  0x2b   :  { %59 = dma.hbm_to_vmem [thread:$0]  %s1534_s3, 6144, %s54_s8, [#allocation9], %s1412_s23, %s1412_s23, %s1413_s24  }
  0x2c   :  { %1402 = dma.done.wait [#allocation3], 256  }
  0x2d   :  { %1403 = vsyncadd [#allocation3], 4294967040 }
  0x2e   :  { %1404 = dma.done.wait [#allocation6], 6208  }
  0x2f   :  { %1405 = vsyncadd [#allocation6], 4294961088 }
  0x30   :  { %1406 = dma.done.wait [#allocation9], 6144  }
  0x31   :  { %1407 = vsyncadd [#allocation9], 4294961152  ;;  %v129_v0 = vld [vmem:[#allocation5 + $0x78] sm:$0xff]  ;;  %v128_v1 = vld [vmem:[#allocation5 + $0x70] sm:$0xff]  ;;  %s1416_s17 = smov [#allocation10]  }
  0x32   :  { %1037 = vmatprep.subr.mxu0 %v129_v0  ;;  %v127_v2 = vld [vmem:[#allocation5 + $0x68] sm:$0xff]  ;;  %v126_v3 = vld [vmem:[#allocation5 + $0x60] sm:$0xff]  ;;  %v1468_v4 = vld [vmem:[#allocation2] sm:$0xff]  ;;  %s897_s18 = sshll.u32 %s1416_s17, 4  ;;  %s898_s18 = int_to_ptr.vmem [resolvable:$true] %s897_s18 }
  0x33   :  { %1038 = vmatpush3.msra.mxu0 %v129_v0  ;;  %v1470_v5 = vld [vmem:[#allocation2 + $0x8] sm:$0xff]  ;;  %v82_v7 = vand.u32 2147483647, %v1468_v4  ;;  %v124_v9 = vld [vmem:[#allocation5 + $0x50] sm:$0xff]  ;;  %v123_v12 = vld [vmem:[#allocation5 + $0x48] sm:$0xff]  ;;  %v76_v36 = vmax.f32 %v1468_v4, 0.0  ;;  %vm78_vm2 = vcmp.ne.f32.partialorder %v1468_v4, %v1468_v4  ;;  %p1387_p7 = scmp.lt.s32.totalorder %s898_s18, %s898_s18 }
  0x34   :  { %1039 = vmatprep.subr.mxu0 %v128_v1  ;;  %v125_v6 = vld [vmem:[#allocation5 + $0x58] sm:$0xff]  ;;  %v83_v8 = vand.u32 2147483647, %v1470_v5  ;;  %v122_v15 = vld [vmem:[#allocation5 + $0x40] sm:$0xff]  ;;  %v120_v17 = vld [vmem:[#allocation5 + $0x30] sm:$0xff]  ;;  %v77_v40 = vmax.f32 %v1470_v5, 0.0  ;;  %vm79_vm3 = vcmp.ne.f32.partialorder %v1470_v5, %v1470_v5 }
  0x35   :  { %1040 = vmatpush3.msra.mxu0 %v128_v1  ;;  %v84_v10 = vsub.f32 0.0, %v82_v7  ;;  %v121_v16 = vld [vmem:[#allocation5 + $0x38] sm:$0xff]  ;;  %v119_v18 = vld [vmem:[#allocation5 + $0x28] sm:$0xff]  ;;  %v118_v19 = vld [vmem:[#allocation5 + $0x20] sm:$0xff]  ;;  %s1382_s19 = scalar_lea.vmem %s898_s18, 256 }
  0x36   :  { %1041 = vmatprep.subr.mxu0 %v127_v2  ;;  %v85_v11 = vsub.f32 0.0, %v83_v8  ;;  %v117_v20 = vld [vmem:[#allocation5 + $0x18] sm:$0xff]  ;;  %v116_v21 = vld [vmem:[#allocation5 + $0x10] sm:$0xff]  ;;  %v115_v24 = vld [vmem:[#allocation5 + $0x8] sm:$0xff]  ;;  %p1383_p6 = scmp.ne.s32.totalorder %s898_s18, %s1382_s19  ;;  %p1388_p8 = scmp.lt.s32.totalorder %s1382_s19, %s1382_s19 }
  0x37   :  { %1042 = vmatpush3.msra.mxu0 %v127_v2  ;;  %v86_v13 = vmul.f32 1.442695, %v84_v10  ;;  %v114_v27 = vld [vmem:[#allocation5] sm:$0xff]  ;;  %v262_v51 = vld [vmem:[#allocation8 + $0x70] sm:$0xff]  ;;  %v261_v52 = vld [vmem:[#allocation8 + $0x68] sm:$0xff] }
  0x38   :  { %1043 = vmatprep.subr.mxu0 %v126_v3  ;;  %v88_v14 = vmul.f32 1.442695, %v85_v11  ;;  %v263_v50 = vld [vmem:[#allocation8 + $0x78] sm:$0xff]  ;;  %v260_v53 = vld [vmem:[#allocation8 + $0x60] sm:$0xff]  ;;  %v258_v55 = vld [vmem:[#allocation8 + $0x50] sm:$0xff]  ;;  %p1389_p9 = por %p1388_p8, %p1387_p7 }
  0x39   :  { %1044 = vmatpush3.msra.mxu0 %v126_v3  ;;  %1254 = vpow2.f32 %v86_v13  ;;  %1072 = vmatprep.subr.mxu1 %v263_v50  ;;  %v259_v54 = vld [vmem:[#allocation8 + $0x58] sm:$0xff]  ;;  %v257_v56 = vld [vmem:[#allocation8 + $0x48] sm:$0xff]  ;;  %v256_v57 = vld [vmem:[#allocation8 + $0x40] sm:$0xff] }
  0x3a   :  { %1045 = vmatprep.subr.mxu0 %v125_v6  ;;  %1256 = vpow2.f32 %v88_v14  ;;  %1073 = vmatpush3.msra.mxu1 %v263_v50  ;;  %v255_v58 = vld [vmem:[#allocation8 + $0x38] sm:$0xff]  ;;  %v254_v59 = vld [vmem:[#allocation8 + $0x30] sm:$0xff]  ;;  %v253_v60 = vld [vmem:[#allocation8 + $0x28] sm:$0xff]  ;;  %p1390_p10 = pnand %p1389_p9, %p1383_p6 }
  0x3b   :  { %1046 = vmatpush3.msra.mxu0 %v125_v6  ;;  %1074 = vmatprep.subr.mxu1 %v262_v51  ;;  %v252_v61 = vld [vmem:[#allocation8 + $0x20] sm:$0xff]  ;;  %v251_v62 = vld [vmem:[#allocation8 + $0x18] sm:$0xff]  ;;  %v250_v63 = vld [vmem:[#allocation8 + $0x10] sm:$0xff] }
  0x3c   :  { %1047 = vmatprep.subr.mxu0 %v124_v9  ;;  %1075 = vmatpush3.msra.mxu1 %v262_v51  ;;  %v249_v0 = vld [vmem:[#allocation8 + $0x8] sm:$0xff]  ;;  %v248_v1 = vld [vmem:[#allocation8] sm:$0xff]  ;;  %v913_v2 = vld [vmem:[#allocation7] ss:$0 sm:$0xff] }
  0x3d   :  { %1048 = vmatpush3.msra.mxu0 %v124_v9  ;;  %1076 = vmatprep.subr.mxu1 %v261_v52  ;;  %v391_v50 = vld [vmem:[#allocation5 + $0xb0] sm:$0xff]  ;;  %v390_v51 = vld [vmem:[#allocation5 + $0xa8] sm:$0xff] }
  0x3e   :  { %1049 = vmatprep.subr.mxu0 %v123_v12  ;;  %1077 = vmatpush3.msra.mxu1 %v261_v52  ;;  %v389_v52 = vld [vmem:[#allocation5 + $0xa0] sm:$0xff] }
  0x3f   :  { %1050 = vmatpush3.msra.mxu0 %v123_v12  ;;  %1078 = vmatprep.subr.mxu1 %v260_v53 }
  0x40   :  { %1051 = vmatprep.subr.mxu0 %v122_v15  ;;  %1079 = vmatpush3.msra.mxu1 %v260_v53  ;;  %v388_v53 = vld [vmem:[#allocation5 + $0x98] sm:$0xff] }
  0x41   :  { %1052 = vmatpush3.msra.mxu0 %v122_v15  ;;  %1080 = vmatprep.subr.mxu1 %v259_v54 }
  0x42   :  { %1053 = vmatprep.subr.mxu0 %v121_v16  ;;  %1081 = vmatpush3.msra.mxu1 %v259_v54  ;;  %v387_v54 = vld [vmem:[#allocation5 + $0x90] sm:$0xff] }
  0x43   :  { %1054 = vmatpush3.msra.mxu0 %v121_v16  ;;  %1082 = vmatprep.subr.mxu1 %v258_v55 }
  0x44   :  { %1055 = vmatprep.subr.mxu0 %v120_v17  ;;  %1083 = vmatpush3.msra.mxu1 %v258_v55  ;;  %v386_v55 = vld [vmem:[#allocation5 + $0x88] sm:$0xff] }
  0x45   :  { %1056 = vmatpush3.msra.mxu0 %v120_v17  ;;  %1084 = vmatprep.subr.mxu1 %v257_v56 }
  0x46   :  { %1057 = vmatprep.subr.mxu0 %v119_v18  ;;  %v1255_v22 = vpop.eup %1254  ;;  %1085 = vmatpush3.msra.mxu1 %v257_v56  ;;  %v385_v56 = vld [vmem:[#allocation5 + $0x80] sm:$0xff] }
  0x47   :  { %1058 = vmatpush3.msra.mxu0 %v119_v18  ;;  %v1257_v23 = vpop.eup %1256  ;;  %v90_v25 = vadd.f32 1.0, %v1255_v22  ;;  %v93_v28 = vmul.f32 -0.5, %v1255_v22  ;;  %v96_v31 = vand.u32 2147483647, %v1255_v22  ;;  %1086 = vmatprep.subr.mxu1 %v256_v57 }
  0x48   :  { %1059 = vmatprep.subr.mxu0 %v118_v19  ;;  %v99_v26 = vadd.f32 1.0, %v1257_v23  ;;  %v102_v29 = vmul.f32 -0.5, %v1257_v23  ;;  %v105_v33 = vand.u32 2147483647, %v1257_v23  ;;  %1087 = vmatpush3.msra.mxu1 %v256_v57  ;;  %v916_v57 = vld [vmem:[%s1535_s4] ss:$0 sm:$0xff] }
  0x49   :  { %1060 = vmatpush3.msra.mxu0 %v118_v19  ;;  %1258 = vlog2.f32 %v90_v25  ;;  %v94_v30 = vadd.f32 1.0, %v93_v28  ;;  %vm97_vm0 = vcmp.lt.f32.partialorder %v96_v31, 0.0004427343  ;;  %1088 = vmatprep.subr.mxu1 %v255_v58 }
  0x4a   :  { %1061 = vmatprep.subr.mxu0 %v117_v20  ;;  %1260 = vlog2.f32 %v99_v26  ;;  %v103_v32 = vadd.f32 1.0, %v102_v29  ;;  %vm106_vm1 = vcmp.lt.f32.partialorder %v105_v33, 0.0004427343  ;;  %1089 = vmatpush3.msra.mxu1 %v255_v58 }
  0x4b   :  { %1062 = vmatpush3.msra.mxu0 %v117_v20  ;;  %v95_v34 = vmul.f32 %v1255_v22, %v94_v30  ;;  %1090 = vmatprep.subr.mxu1 %v254_v59 }
  0x4c   :  { %1063 = vmatprep.subr.mxu0 %v116_v21  ;;  %v104_v37 = vmul.f32 %v1257_v23, %v103_v32  ;;  %1091 = vmatpush3.msra.mxu1 %v254_v59 }
  0x4d   :  { %1064 = vmatpush3.msra.mxu0 %v116_v21  ;;  %1092 = vmatprep.subr.mxu1 %v253_v60 }
  0x4e   :  { %1065 = vmatprep.subr.mxu0 %v115_v24  ;;  %1093 = vmatpush3.msra.mxu1 %v253_v60 }
  0x4f   :  { %1066 = vmatpush3.msra.mxu0 %v115_v24  ;;  %1094 = vmatprep.subr.mxu1 %v252_v61 }
  0x50   :  { %1067 = vmatprep.subr.mxu0 %v114_v27  ;;  %1095 = vmatpush3.msra.mxu1 %v252_v61 }
  0x51   :  { %1068 = vmatpush3.msra.mxu0 %v114_v27  ;;  %1096 = vmatprep.subr.mxu1 %v251_v62 }
  0x52   :  { %1097 = vmatpush3.msra.mxu1 %v251_v62 }
  0x53   :  { %1098 = vmatprep.subr.mxu1 %v250_v63 }
  0x54   :  { %1099 = vmatpush3.msra.mxu1 %v250_v63 }
  0x55   :  { %1100 = vmatprep.subr.mxu1 %v249_v0 }
  0x56   :  { %v1259_v35 = vpop.eup %1258  ;;  %1101 = vmatpush3.msra.mxu1 %v249_v0 }
  0x57   :  { %v1261_v38 = vpop.eup %1260  ;;  %v92_v39 = vmul.f32 0.6931472, %v1259_v35  ;;  %1102 = vmatprep.subr.mxu1 %v248_v1 }
  0x58   :  { %v101_v41 = vmul.f32 0.6931472, %v1261_v38  ;;  %1103 = vmatpush3.msra.mxu1 %v248_v1 }
  0x59   :  { %v98_v42 = vsel %vm97_vm0, %v95_v34, %v92_v39 }
  0x5a   :  { %v108_v43 = vadd.f32 %v98_v42, %v76_v36  ;;  %v107_v44 = vsel %vm106_vm1, %v104_v37, %v101_v41  ;;  %v400_v41 = vld [vmem:[#allocation5 + $0xf8] sm:$0xff]  ;;  %v399_v42 = vld [vmem:[#allocation5 + $0xf0] sm:$0xff] }
  0x5b   :  { %v109_v45 = vadd.f32 %v107_v44, %v77_v40  ;;  %1107 = vmatprep.subr.mxu0 %v400_v41  ;;  %v397_v44 = vld [vmem:[#allocation5 + $0xe0] sm:$0xff] }
  0x5c   :  { %v110_v46 = vsel %vm78_vm2, %v1468_v4, %v108_v43  ;;  %v398_v43 = vld [vmem:[#allocation5 + $0xe8] sm:$0xff] }
  0x5d   :  { %v911_v47 = vadd.f32 -0.6931472, %v110_v46  ;;  %v111_v48 = vsel %vm79_vm3, %v1470_v5, %v109_v45  ;;  %v396_v45 = vld [vmem:[#allocation5 + $0xd8] sm:$0xff]  ;;  %v395_v46 = vld [vmem:[#allocation5 + $0xd0] sm:$0xff] }
  0x5e   :  { %v912_v49 = vadd.f32 -0.6931472, %v111_v48  ;;  %v393_v48 = vld [vmem:[#allocation5 + $0xc0] sm:$0xff] }
  0x5f   :  { %1069 = vmatprep.mubr.f32.mxu0 %v911_v47  ;;  %v394_v47 = vld [vmem:[#allocation5 + $0xc8] sm:$0xff] }
  0x60   :  { %1070 = vmatmul.mubr.f32.vlgmr.msra.gmra.mxu0 %v912_v49  ;;  %v392_v49 = vld [vmem:[#allocation5 + $0xb8] sm:$0xff] }
  0x61   :  { %1108 = vmatpush3.msra.mxu0 %v400_v41  ;;  %v526_v41 = vld [vmem:[#allocation8 + $0xb0] sm:$0xff] }
  0x62   :  { %1109 = vmatprep.subr.mxu0 %v399_v42 }
  0x63   :  { %1110 = vmatpush3.msra.mxu0 %v399_v42  ;;  %v525_v42 = vld [vmem:[#allocation8 + $0xa8] sm:$0xff] }
  0x64   :  { %1111 = vmatprep.subr.mxu0 %v398_v43 }
  0x65   :  { %1112 = vmatpush3.msra.mxu0 %v398_v43  ;;  %v524_v43 = vld [vmem:[#allocation8 + $0xa0] sm:$0xff] }
  0x66   :  { %1113 = vmatprep.subr.mxu0 %v397_v44 }
  0x67   :  { %1114 = vmatpush3.msra.mxu0 %v397_v44  ;;  %v523_v44 = vld [vmem:[#allocation8 + $0x98] sm:$0xff] }
  0x68   :  { %1115 = vmatprep.subr.mxu0 %v396_v45 }
  0x69   :  { %1116 = vmatpush3.msra.mxu0 %v396_v45  ;;  %v522_v45 = vld [vmem:[#allocation8 + $0x90] sm:$0xff] }
  0x6a   :  { %1117 = vmatprep.subr.mxu0 %v395_v46 }
  0x6b   :  { %1118 = vmatpush3.msra.mxu0 %v395_v46  ;;  %v521_v46 = vld [vmem:[#allocation8 + $0x88] sm:$0xff] }
  0x6c   :  { %1119 = vmatprep.subr.mxu0 %v394_v47 }
  0x6d   :  { %1120 = vmatpush3.msra.mxu0 %v394_v47  ;;  %v520_v47 = vld [vmem:[#allocation8 + $0x80] sm:$0xff] }
  0x6e   :  { %1121 = vmatprep.subr.mxu0 %v393_v48 }
  0x6f   :  { %1122 = vmatpush3.msra.mxu0 %v393_v48  ;;  %v919_v48 = vld [vmem:[#allocation7 + $0x1] ss:$0 sm:$0xff] }
  0x70   :  { %1123 = vmatprep.subr.mxu0 %v392_v49 }
  0x71   :  { %1124 = vmatpush3.msra.mxu0 %v392_v49 }
  0x72   :  { %1125 = vmatprep.subr.mxu0 %v391_v50 }
  0x73   :  { %1126 = vmatpush3.msra.mxu0 %v391_v50 }
  0x74   :  { %1127 = vmatprep.subr.mxu0 %v390_v51 }
  0x75   :  { %1128 = vmatpush3.msra.mxu0 %v390_v51 }
  0x76   :  { %1129 = vmatprep.subr.mxu0 %v389_v52 }
  0x77   :  { %1130 = vmatpush3.msra.mxu0 %v389_v52 }
  0x78   :  { %1131 = vmatprep.subr.mxu0 %v388_v53 }
  0x79   :  { %1132 = vmatpush3.msra.mxu0 %v388_v53 }
  0x7a   :  { %1133 = vmatprep.subr.mxu0 %v387_v54 }
  0x7b   :  { %1134 = vmatpush3.msra.mxu0 %v387_v54 }
  0x7c   :  { %1135 = vmatprep.subr.mxu0 %v386_v55 }
  0x7d   :  { %1136 = vmatpush3.msra.mxu0 %v386_v55 }
  0x7e   :  { %1137 = vmatprep.subr.mxu0 %v385_v56 }
  0x7f   :  { %1138 = vmatpush3.msra.mxu0 %v385_v56 }
 0x120   :  { %v1071_v3 = vpop.f32.mrf.mxu0 }
 0x121   :  { %v207_v6 = vadd.f32 %v1071_v3, %v913_v2 }
 0x122   :  { %v201_v7 = vpop.f32.mrf.mxu0 }
 0x123   :  { %v217_v8 = vand.u32 2147483647, %v207_v6  ;;  %v202_v9 = vadd.f32 %v913_v2, %v201_v7  ;;  %v211_v29 = vmax.f32 %v207_v6, 0.0  ;;  %vm213_vm6 = vcmp.ne.f32.partialorder %v207_v6, %v207_v6 }
 0x125   :  { %v219_v10 = vsub.f32 0.0, %v217_v8  ;;  %v216_v11 = vand.u32 2147483647, %v202_v9  ;;  %v210_v33 = vmax.f32 %v202_v9, 0.0  ;;  %vm212_vm7 = vcmp.ne.f32.partialorder %v202_v9, %v202_v9 }
 0x127   :  { %v222_v12 = vmul.f32 1.442695, %v219_v10  ;;  %v218_v13 = vsub.f32 0.0, %v216_v11 }
 0x129   :  { %1262 = vpow2.f32 %v222_v12  ;;  %v220_v14 = vmul.f32 1.442695, %v218_v13 }
 0x12b   :  { %1264 = vpow2.f32 %v220_v14 }
 0x136   :  { %v1263_v15 = vpop.eup %1262 }
 0x137   :  { %v233_v16 = vadd.f32 1.0, %v1263_v15  ;;  %v236_v19 = vmul.f32 -0.5, %v1263_v15  ;;  %v239_v22 = vand.u32 2147483647, %v1263_v15 }
 0x138   :  { %v1265_v17 = vpop.eup %1264 }
 0x139   :  { %v224_v18 = vadd.f32 1.0, %v1265_v17  ;;  %1266 = vlog2.f32 %v233_v16  ;;  %v227_v20 = vmul.f32 -0.5, %v1265_v17  ;;  %v237_v21 = vadd.f32 1.0, %v236_v19 }
 0x13a   :  { %v230_v25 = vand.u32 2147483647, %v1265_v17  ;;  %vm240_vm4 = vcmp.lt.f32.partialorder %v239_v22, 0.0004427343 }
 0x13b   :  { %1268 = vlog2.f32 %v224_v18  ;;  %v228_v23 = vadd.f32 1.0, %v227_v20  ;;  %v238_v27 = vmul.f32 %v1263_v15, %v237_v21 }
 0x13c   :  { %vm231_vm5 = vcmp.lt.f32.partialorder %v230_v25, 0.0004427343 }
 0x13d   :  { %v229_v31 = vmul.f32 %v1265_v17, %v228_v23 }
 0x146   :  { %v1267_v24 = vpop.eup %1266 }
 0x147   :  { %v235_v26 = vmul.f32 0.6931472, %v1267_v24 }
 0x148   :  { %v1269_v28 = vpop.eup %1268 }
 0x149   :  { %v226_v30 = vmul.f32 0.6931472, %v1269_v28  ;;  %v241_v32 = vsel %vm240_vm4, %v238_v27, %v235_v26 }
 0x14a   :  { %v243_v34 = vadd.f32 %v241_v32, %v211_v29  ;;  %v535_v32 = vld [vmem:[#allocation8 + $0xf8] sm:$0xff] }
 0x14b   :  { %v232_v35 = vsel %vm231_vm5, %v229_v31, %v226_v30  ;;  %1142 = vmatprep.subr.mxu1 %v535_v32 }
 0x14c   :  { %v242_v36 = vadd.f32 %v232_v35, %v210_v33  ;;  %v245_v37 = vsel %vm213_vm6, %v207_v6, %v243_v34  ;;  %v534_v33 = vld [vmem:[#allocation8 + $0xf0] sm:$0xff]  ;;  %v533_v34 = vld [vmem:[#allocation8 + $0xe8] sm:$0xff]  ;;  %v532_v35 = vld [vmem:[#allocation8 + $0xe0] sm:$0xff] }
 0x14d   :  { %v915_v40 = vadd.f32 -0.6931472, %v245_v37  ;;  %v530_v37 = vld [vmem:[#allocation8 + $0xd0] sm:$0xff] }
 0x14e   :  { %v244_v38 = vsel %vm212_vm7, %v202_v9, %v242_v36  ;;  %v531_v36 = vld [vmem:[#allocation8 + $0xd8] sm:$0xff] }
 0x14f   :  { %v914_v39 = vadd.f32 -0.6931472, %v244_v38  ;;  %v529_v38 = vld [vmem:[#allocation8 + $0xc8] sm:$0xff] }
 0x151   :  { %1104 = vmatprep.mubr.f32.mxu1 %v914_v39  ;;  %v528_v39 = vld [vmem:[#allocation8 + $0xc0] sm:$0xff] }
 0x152   :  { %1105 = vmatmul.mubr.f32.vlgmr.msra.gmra.mxu1 %v915_v40  ;;  %v527_v40 = vld [vmem:[#allocation8 + $0xb8] sm:$0xff] }
 0x153   :  { %1143 = vmatpush3.msra.mxu1 %v535_v32  ;;  %v663_v32 = vld [vmem:[#allocation5 + $0x130] sm:$0xff] }
 0x154   :  { %1144 = vmatprep.subr.mxu1 %v534_v33 }
 0x155   :  { %1145 = vmatpush3.msra.mxu1 %v534_v33  ;;  %v662_v33 = vld [vmem:[#allocation5 + $0x128] sm:$0xff] }
 0x156   :  { %1146 = vmatprep.subr.mxu1 %v533_v34 }
 0x157   :  { %1147 = vmatpush3.msra.mxu1 %v533_v34  ;;  %v661_v34 = vld [vmem:[#allocation5 + $0x120] sm:$0xff] }
 0x158   :  { %1148 = vmatprep.subr.mxu1 %v532_v35 }
 0x159   :  { %1149 = vmatpush3.msra.mxu1 %v532_v35  ;;  %v660_v35 = vld [vmem:[#allocation5 + $0x118] sm:$0xff] }
 0x15a   :  { %1150 = vmatprep.subr.mxu1 %v531_v36 }
 0x15b   :  { %1151 = vmatpush3.msra.mxu1 %v531_v36  ;;  %v659_v36 = vld [vmem:[#allocation5 + $0x110] sm:$0xff] }
 0x15c   :  { %1152 = vmatprep.subr.mxu1 %v530_v37 }
 0x15d   :  { %1153 = vmatpush3.msra.mxu1 %v530_v37  ;;  %v658_v37 = vld [vmem:[#allocation5 + $0x108] sm:$0xff] }
 0x15e   :  { %1154 = vmatprep.subr.mxu1 %v529_v38 }
 0x15f   :  { %1155 = vmatpush3.msra.mxu1 %v529_v38  ;;  %v657_v38 = vld [vmem:[#allocation5 + $0x100] sm:$0xff] }
 0x160   :  { %1156 = vmatprep.subr.mxu1 %v528_v39 }
 0x161   :  { %1157 = vmatpush3.msra.mxu1 %v528_v39  ;;  %v922_v39 = vld [vmem:[%s1535_s4 + $0x1] ss:$0 sm:$0xff] }
 0x162   :  { %1158 = vmatprep.subr.mxu1 %v527_v40 }
 0x163   :  { %1159 = vmatpush3.msra.mxu1 %v527_v40 }
 0x164   :  { %1160 = vmatprep.subr.mxu1 %v526_v41 }
 0x165   :  { %1161 = vmatpush3.msra.mxu1 %v526_v41 }
 0x166   :  { %1162 = vmatprep.subr.mxu1 %v525_v42 }
 0x167   :  { %1163 = vmatpush3.msra.mxu1 %v525_v42 }
 0x168   :  { %1164 = vmatprep.subr.mxu1 %v524_v43 }
 0x169   :  { %1165 = vmatpush3.msra.mxu1 %v524_v43 }
 0x16a   :  { %1166 = vmatprep.subr.mxu1 %v523_v44 }
 0x16b   :  { %1167 = vmatpush3.msra.mxu1 %v523_v44 }
 0x16c   :  { %1168 = vmatprep.subr.mxu1 %v522_v45 }
 0x16d   :  { %1169 = vmatpush3.msra.mxu1 %v522_v45 }
 0x16e   :  { %1170 = vmatprep.subr.mxu1 %v521_v46 }
 0x16f   :  { %1171 = vmatpush3.msra.mxu1 %v521_v46 }
 0x170   :  { %1172 = vmatprep.subr.mxu1 %v520_v47 }
 0x171   :  { %1173 = vmatpush3.msra.mxu1 %v520_v47 }
 0x212   :  { %v1106_v58 = vpop.f32.mrf.mxu1 }
 0x213   :  { %v341_v59 = vadd.f32 %v1106_v58, %v916_v57 }
 0x214   :  { %v335_v60 = vpop.f32.mrf.mxu1 }
 0x215   :  { %v1486_v61 = vadd.f32 %v341_v59, %v1470_v5  ;;  %v336_v62 = vadd.f32 %v916_v57, %v335_v60 }
 0x217   :  { %v353_v63 = vand.u32 2147483647, %v1486_v61  ;;  %v1490_v0 = vadd.f32 %v336_v62, %v1468_v4  ;;  %v347_v20 = vmax.f32 %v1486_v61, 0.0  ;;  %vm349_vm10 = vcmp.ne.f32.partialorder %v1486_v61, %v1486_v61 }
 0x219   :  { %v355_v1 = vsub.f32 0.0, %v353_v63  ;;  %v352_v2 = vand.u32 2147483647, %v1490_v0  ;;  %v346_v24 = vmax.f32 %v1490_v0, 0.0  ;;  %vm348_vm11 = vcmp.ne.f32.partialorder %v1490_v0, %v1490_v0 }
 0x21b   :  { %v358_v3 = vmul.f32 1.442695, %v355_v1  ;;  %v354_v6 = vsub.f32 0.0, %v352_v2 }
 0x21d   :  { %1270 = vpow2.f32 %v358_v3  ;;  %v356_v7 = vmul.f32 1.442695, %v354_v6 }
 0x21f   :  { %1272 = vpow2.f32 %v356_v7 }
 0x22a   :  { %v1271_v8 = vpop.eup %1270 }
 0x22b   :  { %v369_v9 = vadd.f32 1.0, %v1271_v8  ;;  %v372_v5 = vmul.f32 -0.5, %v1271_v8  ;;  %v375_v14 = vand.u32 2147483647, %v1271_v8 }
 0x22c   :  { %v1273_v10 = vpop.eup %1272 }
 0x22d   :  { %v360_v11 = vadd.f32 1.0, %v1273_v10  ;;  %1274 = vlog2.f32 %v369_v9  ;;  %v363_v12 = vmul.f32 -0.5, %v1273_v10  ;;  %v373_v13 = vadd.f32 1.0, %v372_v5 }
 0x22e   :  { %v366_v16 = vand.u32 2147483647, %v1273_v10  ;;  %vm376_vm8 = vcmp.lt.f32.partialorder %v375_v14, 0.0004427343 }
 0x22f   :  { %1276 = vlog2.f32 %v360_v11  ;;  %v364_v4 = vadd.f32 1.0, %v363_v12  ;;  %v374_v18 = vmul.f32 %v1271_v8, %v373_v13 }
 0x230   :  { %vm367_vm9 = vcmp.lt.f32.partialorder %v366_v16, 0.0004427343 }
 0x231   :  { %v365_v22 = vmul.f32 %v1273_v10, %v364_v4 }
 0x23a   :  { %v1275_v15 = vpop.eup %1274 }
 0x23b   :  { %v371_v17 = vmul.f32 0.6931472, %v1275_v15 }
 0x23c   :  { %v1277_v19 = vpop.eup %1276 }
 0x23d   :  { %v362_v21 = vmul.f32 0.6931472, %v1277_v19  ;;  %v377_v23 = vsel %vm376_vm8, %v374_v18, %v371_v17 }
 0x23e   :  { %v379_v25 = vadd.f32 %v377_v23, %v347_v20  ;;  %v672_v23 = vld [vmem:[#allocation5 + $0x178] sm:$0xff] }
 0x23f   :  { %v368_v26 = vsel %vm367_vm9, %v365_v22, %v362_v21  ;;  %1177 = vmatprep.subr.mxu0 %v672_v23 }
 0x240   :  { %v378_v27 = vadd.f32 %v368_v26, %v346_v24  ;;  %v381_v28 = vsel %vm349_vm10, %v1486_v61, %v379_v25  ;;  %v671_v24 = vld [vmem:[#allocation5 + $0x170] sm:$0xff]  ;;  %v670_v25 = vld [vmem:[#allocation5 + $0x168] sm:$0xff]  ;;  %v669_v26 = vld [vmem:[#allocation5 + $0x160] sm:$0xff] }
 0x241   :  { %v918_v31 = vadd.f32 -0.6931472, %v381_v28  ;;  %v667_v28 = vld [vmem:[#allocation5 + $0x150] sm:$0xff] }
 0x242   :  { %v380_v29 = vsel %vm348_vm11, %v1490_v0, %v378_v27  ;;  %v668_v27 = vld [vmem:[#allocation5 + $0x158] sm:$0xff] }
 0x243   :  { %v917_v30 = vadd.f32 -0.6931472, %v380_v29  ;;  %v666_v29 = vld [vmem:[#allocation5 + $0x148] sm:$0xff] }
 0x245   :  { %1139 = vmatprep.mubr.f32.mxu0 %v917_v30  ;;  %v665_v30 = vld [vmem:[#allocation5 + $0x140] sm:$0xff] }
 0x246   :  { %1140 = vmatmul.mubr.f32.vlgmr.msra.gmra.mxu0 %v918_v31  ;;  %v664_v31 = vld [vmem:[#allocation5 + $0x138] sm:$0xff] }
 0x247   :  { %1178 = vmatpush3.msra.mxu0 %v672_v23  ;;  %v798_v23 = vld [vmem:[#allocation8 + $0x130] sm:$0xff] }
 0x248   :  { %1179 = vmatprep.subr.mxu0 %v671_v24 }
 0x249   :  { %1180 = vmatpush3.msra.mxu0 %v671_v24  ;;  %v797_v24 = vld [vmem:[#allocation8 + $0x128] sm:$0xff] }
 0x24a   :  { %1181 = vmatprep.subr.mxu0 %v670_v25 }
 0x24b   :  { %1182 = vmatpush3.msra.mxu0 %v670_v25  ;;  %v796_v25 = vld [vmem:[#allocation8 + $0x120] sm:$0xff] }
 0x24c   :  { %1183 = vmatprep.subr.mxu0 %v669_v26 }
 0x24d   :  { %1184 = vmatpush3.msra.mxu0 %v669_v26  ;;  %v795_v26 = vld [vmem:[#allocation8 + $0x118] sm:$0xff] }
 0x24e   :  { %1185 = vmatprep.subr.mxu0 %v668_v27 }
 0x24f   :  { %1186 = vmatpush3.msra.mxu0 %v668_v27  ;;  %v794_v27 = vld [vmem:[#allocation8 + $0x110] sm:$0xff] }
 0x250   :  { %1187 = vmatprep.subr.mxu0 %v667_v28 }
 0x251   :  { %1188 = vmatpush3.msra.mxu0 %v667_v28  ;;  %v793_v28 = vld [vmem:[#allocation8 + $0x108] sm:$0xff] }
 0x252   :  { %1189 = vmatprep.subr.mxu0 %v666_v29 }
 0x253   :  { %1190 = vmatpush3.msra.mxu0 %v666_v29  ;;  %v792_v29 = vld [vmem:[#allocation8 + $0x100] sm:$0xff] }
 0x254   :  { %1191 = vmatprep.subr.mxu0 %v665_v30 }
 0x255   :  { %1192 = vmatpush3.msra.mxu0 %v665_v30  ;;  %v925_v30 = vld [vmem:[#allocation7 + $0x2] ss:$0 sm:$0xff] }
 0x256   :  { %1193 = vmatprep.subr.mxu0 %v664_v31 }
 0x257   :  { %1194 = vmatpush3.msra.mxu0 %v664_v31 }
 0x258   :  { %1195 = vmatprep.subr.mxu0 %v663_v32 }
 0x259   :  { %1196 = vmatpush3.msra.mxu0 %v663_v32 }
 0x25a   :  { %1197 = vmatprep.subr.mxu0 %v662_v33 }
 0x25b   :  { %1198 = vmatpush3.msra.mxu0 %v662_v33 }
 0x25c   :  { %1199 = vmatprep.subr.mxu0 %v661_v34 }
 0x25d   :  { %1200 = vmatpush3.msra.mxu0 %v661_v34 }
 0x25e   :  { %1201 = vmatprep.subr.mxu0 %v660_v35 }
 0x25f   :  { %1202 = vmatpush3.msra.mxu0 %v660_v35 }
 0x260   :  { %1203 = vmatprep.subr.mxu0 %v659_v36 }
 0x261   :  { %1204 = vmatpush3.msra.mxu0 %v659_v36 }
 0x262   :  { %1205 = vmatprep.subr.mxu0 %v658_v37 }
 0x263   :  { %1206 = vmatpush3.msra.mxu0 %v658_v37 }
 0x264   :  { %1207 = vmatprep.subr.mxu0 %v657_v38 }
 0x265   :  { %1208 = vmatpush3.msra.mxu0 %v657_v38 }
 0x306   :  { %v1141_v49 = vpop.f32.mrf.mxu0 }
 0x307   :  { %v478_v50 = vadd.f32 %v1141_v49, %v919_v48 }
 0x308   :  { %v472_v51 = vpop.f32.mrf.mxu0 }
 0x309   :  { %v488_v52 = vand.u32 2147483647, %v478_v50  ;;  %v473_v53 = vadd.f32 %v919_v48, %v472_v51  ;;  %v482_v12 = vmax.f32 %v478_v50, 0.0  ;;  %vm484_vm14 = vcmp.ne.f32.partialorder %v478_v50, %v478_v50 }
 0x30b   :  { %v490_v54 = vsub.f32 0.0, %v488_v52  ;;  %v487_v55 = vand.u32 2147483647, %v473_v53  ;;  %v481_v16 = vmax.f32 %v473_v53, 0.0  ;;  %vm483_vm15 = vcmp.ne.f32.partialorder %v473_v53, %v473_v53 }
 0x30d   :  { %v493_v56 = vmul.f32 1.442695, %v490_v54  ;;  %v489_v57 = vsub.f32 0.0, %v487_v55 }
 0x30f   :  { %1278 = vpow2.f32 %v493_v56  ;;  %v491_v58 = vmul.f32 1.442695, %v489_v57 }
 0x311   :  { %1280 = vpow2.f32 %v491_v58 }
 0x31c   :  { %v1279_v59 = vpop.eup %1278 }
 0x31d   :  { %v504_v60 = vadd.f32 1.0, %v1279_v59  ;;  %v507_v1 = vmul.f32 -0.5, %v1279_v59  ;;  %v510_v6 = vand.u32 2147483647, %v1279_v59 }
 0x31e   :  { %v1281_v62 = vpop.eup %1280 }
 0x31f   :  { %1282 = vlog2.f32 %v504_v60  ;;  %v495_v63 = vadd.f32 1.0, %v1281_v62  ;;  %v498_v2 = vmul.f32 -0.5, %v1281_v62  ;;  %v508_v3 = vadd.f32 1.0, %v507_v1 }
 0x320   :  { %v501_v9 = vand.u32 2147483647, %v1281_v62  ;;  %vm511_vm12 = vcmp.lt.f32.partialorder %v510_v6, 0.0004427343 }
 0x321   :  { %1284 = vlog2.f32 %v495_v63  ;;  %v499_v7 = vadd.f32 1.0, %v498_v2  ;;  %v509_v11 = vmul.f32 %v1279_v59, %v508_v3 }
 0x322   :  { %vm502_vm13 = vcmp.lt.f32.partialorder %v501_v9, 0.0004427343 }
 0x323   :  { %v500_v4 = vmul.f32 %v1281_v62, %v499_v7 }
 0x32c   :  { %v1283_v8 = vpop.eup %1282 }
 0x32d   :  { %v506_v10 = vmul.f32 0.6931472, %v1283_v8 }
 0x32e   :  { %v1285_v5 = vpop.eup %1284 }
 0x32f   :  { %v512_v13 = vsel %vm511_vm12, %v509_v11, %v506_v10  ;;  %v497_v14 = vmul.f32 0.6931472, %v1285_v5 }
 0x330   :  { %v514_v15 = vadd.f32 %v512_v13, %v482_v12 }
 0x331   :  { %v503_v17 = vsel %vm502_vm13, %v500_v4, %v497_v14  ;;  %v807_v4 = vld [vmem:[#allocation8 + $0x178] sm:$0xff] }
 0x332   :  { %v513_v18 = vadd.f32 %v503_v17, %v481_v16  ;;  %v516_v19 = vsel %vm484_vm14, %v478_v50, %v514_v15  ;;  %1212 = vmatprep.subr.mxu1 %v807_v4  ;;  %v806_v15 = vld [vmem:[#allocation8 + $0x170] sm:$0xff]  ;;  %v805_v16 = vld [vmem:[#allocation8 + $0x168] sm:$0xff]  ;;  %v804_v17 = vld [vmem:[#allocation8 + $0x160] sm:$0xff] }
 0x333   :  { %v921_v22 = vadd.f32 -0.6931472, %v516_v19  ;;  %v802_v19 = vld [vmem:[#allocation8 + $0x150] sm:$0xff] }
 0x334   :  { %v515_v20 = vsel %vm483_vm15, %v473_v53, %v513_v18  ;;  %v803_v18 = vld [vmem:[#allocation8 + $0x158] sm:$0xff] }
 0x335   :  { %v920_v21 = vadd.f32 -0.6931472, %v515_v20  ;;  %v801_v20 = vld [vmem:[#allocation8 + $0x148] sm:$0xff] }
 0x337   :  { %1174 = vmatprep.mubr.f32.mxu1 %v920_v21  ;;  %v800_v21 = vld [vmem:[#allocation8 + $0x140] sm:$0xff] }
 0x338   :  { %1175 = vmatmul.mubr.f32.vlgmr.msra.gmra.mxu1 %v921_v22  ;;  %v799_v22 = vld [vmem:[#allocation8 + $0x138] sm:$0xff] }
 0x339   :  { %1213 = vmatpush3.msra.mxu1 %v807_v4 }
 0x33a   :  { %1214 = vmatprep.subr.mxu1 %v806_v15 }
 0x33b   :  { %1215 = vmatpush3.msra.mxu1 %v806_v15 }
 0x33c   :  { %1216 = vmatprep.subr.mxu1 %v805_v16 }
 0x33d   :  { %1217 = vmatpush3.msra.mxu1 %v805_v16 }
 0x33e   :  { %1218 = vmatprep.subr.mxu1 %v804_v17 }
 0x33f   :  { %1219 = vmatpush3.msra.mxu1 %v804_v17 }
 0x340   :  { %1220 = vmatprep.subr.mxu1 %v803_v18 }
 0x341   :  { %1221 = vmatpush3.msra.mxu1 %v803_v18 }
 0x342   :  { %1222 = vmatprep.subr.mxu1 %v802_v19 }
 0x343   :  { %1223 = vmatpush3.msra.mxu1 %v802_v19 }
 0x344   :  { %1224 = vmatprep.subr.mxu1 %v801_v20 }
 0x345   :  { %1225 = vmatpush3.msra.mxu1 %v801_v20 }
 0x346   :  { %1226 = vmatprep.subr.mxu1 %v800_v21 }
 0x347   :  { %1227 = vmatpush3.msra.mxu1 %v800_v21 }
 0x348   :  { %1228 = vmatprep.subr.mxu1 %v799_v22 }
 0x349   :  { %1229 = vmatpush3.msra.mxu1 %v799_v22 }
 0x34a   :  { %1230 = vmatprep.subr.mxu1 %v798_v23 }
 0x34b   :  { %1231 = vmatpush3.msra.mxu1 %v798_v23 }
 0x34c   :  { %1232 = vmatprep.subr.mxu1 %v797_v24 }
 0x34d   :  { %1233 = vmatpush3.msra.mxu1 %v797_v24 }
 0x34e   :  { %1234 = vmatprep.subr.mxu1 %v796_v25 }
 0x34f   :  { %1235 = vmatpush3.msra.mxu1 %v796_v25 }
 0x350   :  { %1236 = vmatprep.subr.mxu1 %v795_v26 }
 0x351   :  { %1237 = vmatpush3.msra.mxu1 %v795_v26 }
 0x352   :  { %1238 = vmatprep.subr.mxu1 %v794_v27 }
 0x353   :  { %1239 = vmatpush3.msra.mxu1 %v794_v27 }
 0x354   :  { %1240 = vmatprep.subr.mxu1 %v793_v28 }
 0x355   :  { %1241 = vmatpush3.msra.mxu1 %v793_v28 }
 0x356   :  { %1242 = vmatprep.subr.mxu1 %v792_v29 }
 0x357   :  { %1243 = vmatpush3.msra.mxu1 %v792_v29 }
 0x3f8   :  { %v1176_v40 = vpop.f32.mrf.mxu1 }
 0x3f9   :  { %v613_v41 = vadd.f32 %v1176_v40, %v922_v39 }
 0x3fa   :  { %v607_v42 = vpop.f32.mrf.mxu1 }
 0x3fb   :  { %v1505_v43 = vadd.f32 %v613_v41, %v1486_v61  ;;  %v608_v44 = vadd.f32 %v922_v39, %v607_v42 }
 0x3fd   :  { %v625_v45 = vand.u32 2147483647, %v1505_v43  ;;  %v1509_v46 = vadd.f32 %v608_v44, %v1490_v0  ;;  %v619_v2 = vmax.f32 %v1505_v43, 0.0  ;;  %vm621_vm2 = vcmp.ne.f32.partialorder %v1505_v43, %v1505_v43 }
 0x3ff   :  { %v627_v47 = vsub.f32 0.0, %v625_v45  ;;  %v624_v48 = vand.u32 2147483647, %v1509_v46  ;;  %v618_v8 = vmax.f32 %v1509_v46, 0.0  ;;  %vm620_vm3 = vcmp.ne.f32.partialorder %v1509_v46, %v1509_v46 }
 0x401   :  { %v630_v49 = vmul.f32 1.442695, %v627_v47  ;;  %v626_v50 = vsub.f32 0.0, %v624_v48 }
 0x403   :  { %1286 = vpow2.f32 %v630_v49  ;;  %v628_v51 = vmul.f32 1.442695, %v626_v50 }
 0x405   :  { %1288 = vpow2.f32 %v628_v51 }
 0x410   :  { %v1287_v52 = vpop.eup %1286 }
 0x411   :  { %v641_v53 = vadd.f32 1.0, %v1287_v52  ;;  %v644_v61 = vmul.f32 -0.5, %v1287_v52  ;;  %v647_v58 = vand.u32 2147483647, %v1287_v52 }
 0x412   :  { %v1289_v54 = vpop.eup %1288 }
 0x413   :  { %v632_v55 = vadd.f32 1.0, %v1289_v54  ;;  %1290 = vlog2.f32 %v641_v53  ;;  %v635_v56 = vmul.f32 -0.5, %v1289_v54  ;;  %v645_v57 = vadd.f32 1.0, %v644_v61 }
 0x414   :  { %v638_v60 = vand.u32 2147483647, %v1289_v54  ;;  %vm648_vm0 = vcmp.lt.f32.partialorder %v647_v58, 0.0004427343 }
 0x415   :  { %1292 = vlog2.f32 %v632_v55  ;;  %v636_v0 = vadd.f32 1.0, %v635_v56  ;;  %v646_v63 = vmul.f32 %v1287_v52, %v645_v57 }
 0x416   :  { %vm639_vm1 = vcmp.lt.f32.partialorder %v638_v60, 0.0004427343 }
 0x417   :  { %v637_v6 = vmul.f32 %v1289_v54, %v636_v0 }
 0x420   :  { %v1291_v59 = vpop.eup %1290 }
 0x421   :  { %v643_v62 = vmul.f32 0.6931472, %v1291_v59 }
 0x422   :  { %v1293_v1 = vpop.eup %1292 }
 0x423   :  { %v634_v3 = vmul.f32 0.6931472, %v1293_v1  ;;  %v649_v7 = vsel %vm648_vm0, %v646_v63, %v643_v62 }
 0x424   :  { %v651_v9 = vadd.f32 %v649_v7, %v619_v2  ;;  %v928_v7 = vld [vmem:[%s1535_s4 + $0x2] ss:$0 sm:$0xff] }
 0x425   :  { %v640_v10 = vsel %vm639_vm1, %v637_v6, %v634_v3 }
 0x426   :  { %v650_v11 = vadd.f32 %v640_v10, %v618_v8  ;;  %v653_v5 = vsel %vm621_vm2, %v1505_v43, %v651_v9 }
 0x427   :  { %v924_v14 = vadd.f32 -0.6931472, %v653_v5 }
 0x428   :  { %v652_v12 = vsel %vm620_vm3, %v1509_v46, %v650_v11 }
 0x429   :  { %v923_v13 = vadd.f32 -0.6931472, %v652_v12 }
 0x42b   :  { %1209 = vmatprep.mubr.f32.mxu0 %v923_v13 }
 0x42c   :  { %1210 = vmatmul.mubr.f32.vlgmr.msra.gmra.mxu0 %v924_v14 }
 0x4ec   :  { %v1211_v31 = vpop.f32.mrf.mxu0 }
 0x4ed   :  { %v750_v32 = vadd.f32 %v1211_v31, %v925_v30 }
 0x4ee   :  { %v744_v33 = vpop.f32.mrf.mxu0 }
 0x4ef   :  { %v760_v34 = vand.u32 2147483647, %v750_v32  ;;  %v745_v35 = vadd.f32 %v925_v30, %v744_v33  ;;  %v754_v56 = vmax.f32 %v750_v32, 0.0  ;;  %vm756_vm6 = vcmp.ne.f32.partialorder %v750_v32, %v750_v32 }
 0x4f1   :  { %v762_v36 = vsub.f32 0.0, %v760_v34  ;;  %v759_v37 = vand.u32 2147483647, %v745_v35  ;;  %v753_v60 = vmax.f32 %v745_v35, 0.0  ;;  %vm755_vm7 = vcmp.ne.f32.partialorder %v745_v35, %v745_v35 }
 0x4f3   :  { %v765_v38 = vmul.f32 1.442695, %v762_v36  ;;  %v761_v39 = vsub.f32 0.0, %v759_v37 }
 0x4f5   :  { %1294 = vpow2.f32 %v765_v38  ;;  %v763_v40 = vmul.f32 1.442695, %v761_v39 }
 0x4f7   :  { %1296 = vpow2.f32 %v763_v40 }
 0x502   :  { %v1295_v41 = vpop.eup %1294 }
 0x503   :  { %v776_v42 = vadd.f32 1.0, %v1295_v41  ;;  %v779_v47 = vmul.f32 -0.5, %v1295_v41  ;;  %v782_v50 = vand.u32 2147483647, %v1295_v41 }
 0x504   :  { %v1297_v44 = vpop.eup %1296 }
 0x505   :  { %1298 = vlog2.f32 %v776_v42  ;;  %v767_v45 = vadd.f32 1.0, %v1297_v44  ;;  %v770_v48 = vmul.f32 -0.5, %v1297_v44  ;;  %v780_v49 = vadd.f32 1.0, %v779_v47 }
 0x506   :  { %v773_v53 = vand.u32 2147483647, %v1297_v44  ;;  %vm783_vm4 = vcmp.lt.f32.partialorder %v782_v50, 0.0004427343 }
 0x507   :  { %1300 = vlog2.f32 %v767_v45  ;;  %v771_v51 = vadd.f32 1.0, %v770_v48  ;;  %v781_v55 = vmul.f32 %v1295_v41, %v780_v49 }
 0x508   :  { %vm774_vm5 = vcmp.lt.f32.partialorder %v773_v53, 0.0004427343 }
 0x509   :  { %v772_v0 = vmul.f32 %v1297_v44, %v771_v51 }
 0x512   :  { %v1299_v52 = vpop.eup %1298 }
 0x513   :  { %v778_v54 = vmul.f32 0.6931472, %v1299_v52 }
 0x514   :  { %v1301_v61 = vpop.eup %1300 }
 0x515   :  { %v784_v57 = vsel %vm783_vm4, %v781_v55, %v778_v54  ;;  %v769_v58 = vmul.f32 0.6931472, %v1301_v61 }
 0x516   :  { %v786_v59 = vadd.f32 %v784_v57, %v754_v56 }
 0x517   :  { %v775_v62 = vsel %vm774_vm5, %v772_v0, %v769_v58 }
 0x518   :  { %v785_v63 = vadd.f32 %v775_v62, %v753_v60  ;;  %v788_v1 = vsel %vm756_vm6, %v750_v32, %v786_v59 }
 0x519   :  { %v927_v6 = vadd.f32 -0.6931472, %v788_v1 }
 0x51a   :  { %v787_v2 = vsel %vm755_vm7, %v745_v35, %v785_v63 }
 0x51b   :  { %v926_v3 = vadd.f32 -0.6931472, %v787_v2 }
 0x51d   :  { %1244 = vmatprep.mubr.f32.mxu1 %v926_v3 }
 0x51e   :  { %1245 = vmatmul.mubr.f32.vlgmr.msra.gmra.mxu1 %v927_v6 }
 0x5de   :  { %v1246_v8 = vpop.f32.mrf.mxu1 }
 0x5df   :  { %v885_v9 = vadd.f32 %v1246_v8, %v928_v7 }
 0x5e0   :  { %v879_v10 = vpop.f32.mrf.mxu1 }
 0x5e1   :  { %v889_v11 = vadd.f32 %v885_v9, %v1505_v43  ;;  %v880_v5 = vadd.f32 %v928_v7, %v879_v10 }
 0x5e3   :  { %891 = vst [vmem:[#allocation10 + $0x8] sm:$0xff] %v889_v11  ;;  %v888_v12 = vadd.f32 %v880_v5, %v1509_v46 }
 0x5e5   :  { %890 = vst [vmem:[#allocation10] sm:$0xff] %v888_v12 }
 0x5e6   :  { %1393 = shalt.err (!%p1390_p10)
}
 0x5e7   :  { %903 = dma.vmem_to_hbm [thread:$0]  %s898_s18, 256, %s1536_s5, [#allocation4], %s1412_s23, %s1412_s23, %s1413_s24  }
 0x5e8   :  { %1408 = dma.done.wait [#allocation4], 256  }
 0x5e9   :  { %1409 = vsyncadd [#allocation4], 4294967040 }
 0x5ea   :  { %907 = vsyncpa [#allocation3], 1 }
 0x5eb   :  { %908 = vsyncpa [#allocation6], 1 }
 0x5ec   :  { %909 = vsyncpa [#allocation9], 1 }
 0x5ed   :  { %910 = vsyncpa [#allocation4], 1 }

// kernel: tpu_custom_call.1
= control target key start
LH: loop header
LB: loop body
LE: loop exit
PB: predicated region body
PF: predicated region fallthrough
CT: control target
= control target key end

     0   :  { %10 = vsyncpa [#allocation3], 0  ;;  %s1531_s0 = inlined_call_operand.hbm [shape: f32[16,128], index: 0, kind: input, shape index: {}]   ;;  %s1532_s1 = inlined_call_operand.hbm [shape: f32[3,128,128], index: 1, kind: input, shape index: {}]   ;;  %s1533_s2 = inlined_call_operand.hbm [shape: f32[3,128], index: 2, kind: input, shape index: {}]   ;;  %s1534_s3 = inlined_call_operand.hbm [shape: f32[3,128,128], index: 3, kind: input, shape index: {}]   ;;  %s1535_s4 = inlined_call_operand.vmem [shape: f32[3,128], index: 4, kind: input, shape index: {}]   ;;  %s1536_s5 = inlined_call_operand.hbm [shape: f32[16,128], index: 5, kind: output, shape index: {}]  }
   0x1   :  { %11 = vsyncpa [#allocation6], 0 }
   0x2   :  { %12 = vsyncpa [#allocation9], 0 }
   0x3   :  { %13 = vsyncpa [#allocation4], 0  ;;  %s1410_s18 = smov [#allocation5]   ;;  %s1411_s20 = smov [#allocation2]  }
   0x4   :  { %s31_s19 = sshll.u32 %s1410_s18, 4  ;;  %s19_s21 = sshll.u32 %s1411_s20, 4  ;;  %s32_s19 = int_to_ptr.vmem [resolvable:$true] %s31_s19  ;;  %s20_s21 = int_to_ptr.vmem [resolvable:$true] %s19_s21 }
   0x5   :  { %s1310_s22 = scalar_lea.vmem %s32_s19, 6144  ;;  %p1315_p1 = scmp.lt.s32.totalorder %s32_s19, %s32_s19 }
   0x6   :  { %p1311_p0 = scmp.ne.s32.totalorder %s32_s19, %s1310_s22  ;;  %p1316_p2 = scmp.lt.s32.totalorder %s1310_s22, %s1310_s22 }
   0x8   :  { %p1317_p3 = por %p1316_p2, %p1315_p1 }
   0xa   :  { %p1318_p4 = pnand %p1317_p3, %p1311_p0 }
   0xc   :  { %1321 = shalt.err (!%p1318_p4)
}
   0xd   :  { %s1412_s23 = smov 128   ;;  %s1413_s24 = smov 8  }
   0xe   :  { %37 = dma.hbm_to_vmem [thread:$0]  %s1532_s1, 6144, %s32_s19, [#allocation6], %s1412_s23, %s1412_s23, %s1413_s24  }
   0xf   :  { %s1330_s27 = scalar_lea.vmem %s20_s21, 256  ;;  %p1335_p6 = scmp.lt.s32.totalorder %s20_s21, %s20_s21 }
  0x10   :  { %p1331_p5 = scmp.ne.s32.totalorder %s20_s21, %s1330_s27  ;;  %p1336_p7 = scmp.lt.s32.totalorder %s1330_s27, %s1330_s27 }
  0x12   :  { %p1337_p8 = por %p1336_p7, %p1335_p6 }
  0x14   :  { %p1338_p9 = pnand %p1337_p8, %p1331_p5 }
  0x16   :  { %1341 = shalt.err (!%p1338_p9)
}
  0x17   :  { %25 = dma.hbm_to_vmem [thread:$0]  %s1531_s0, 256, %s20_s21, [#allocation3], %s1412_s23, %s1412_s23, %s1413_s24  }
  0x18   :  { %s1414_s30 = smov [#allocation7]   ;;  %s1415_s7 = smov [#allocation8]  }
  0x19   :  { %s44_s6 = sshll.u32 %s1414_s30, 4  ;;  %s53_s8 = sshll.u32 %s1415_s7, 4  ;;  %s45_s6 = int_to_ptr.vmem [resolvable:$true] %s44_s6  ;;  %s54_s8 = int_to_ptr.vmem [resolvable:$true] %s53_s8 }
  0x1a   :  { %s1350_s1 = scalar_lea.vmem %s45_s6, 64  ;;  %p1355_p11 = scmp.lt.s32.totalorder %s45_s6, %s45_s6 }
  0x1b   :  { %p1351_p10 = scmp.ne.s32.totalorder %s45_s6, %s1350_s1  ;;  %p1356_p12 = scmp.lt.s32.totalorder %s1350_s1, %s1350_s1 }
  0x1d   :  { %p1357_p13 = por %p1356_p12, %p1355_p11 }
  0x1f   :  { %p1358_p0 = pnand %p1357_p13, %p1351_p10 }
  0x21   :  { %1361 = shalt.err (!%p1358_p0)
}
  0x22   :  { %47 = dma.hbm_to_vmem [thread:$0]  %s1533_s2, 64, %s45_s6, [#allocation6]  }
  0x23   :  { %s1370_s11 = scalar_lea.vmem %s54_s8, 6144  ;;  %p1375_p2 = scmp.lt.s32.totalorder %s54_s8, %s54_s8 }
  0x24   :  { %p1371_p1 = scmp.ne.s32.totalorder %s54_s8, %s1370_s11  ;;  %p1376_p3 = scmp.lt.s32.totalorder %s1370_s11, %s1370_s11 }
  0x26   :  { %p1377_p4 = por %p1376_p3, %p1375_p2 }
  0x28   :  { %p1378_p5 = pnand %p1377_p4, %p1371_p1 }
  0x2a   :  { %1381 = shalt.err (!%p1378_p5)
}
  0x2b   :  { %59 = dma.hbm_to_vmem [thread:$0]  %s1534_s3, 6144, %s54_s8, [#allocation9], %s1412_s23, %s1412_s23, %s1413_s24  }
  0x2c   :  { %1402 = dma.done.wait [#allocation3], 256  }
  0x2d   :  { %1403 = vsyncadd [#allocation3], 4294967040 }
  0x2e   :  { %1404 = dma.done.wait [#allocation6], 6208  }
  0x2f   :  { %1405 = vsyncadd [#allocation6], 4294961088 }
  0x30   :  { %1406 = dma.done.wait [#allocation9], 6144  }
  0x31   :  { %1407 = vsyncadd [#allocation9], 4294961152  ;;  %v129_v0 = vld [vmem:[#allocation5 + $0x78] sm:$0xff]  ;;  %v128_v1 = vld [vmem:[#allocation5 + $0x70] sm:$0xff]  ;;  %s1416_s17 = smov [#allocation10]  }
  0x32   :  { %1037 = vmatprep.subr.mxu0 %v129_v0  ;;  %v127_v2 = vld [vmem:[#allocation5 + $0x68] sm:$0xff]  ;;  %v126_v3 = vld [vmem:[#allocation5 + $0x60] sm:$0xff]  ;;  %v1468_v4 = vld [vmem:[#allocation2] sm:$0xff]  ;;  %s897_s18 = sshll.u32 %s1416_s17, 4  ;;  %s898_s18 = int_to_ptr.vmem [resolvable:$true] %s897_s18 }
  0x33   :  { %1038 = vmatpush3.msra.mxu0 %v129_v0  ;;  %v1470_v5 = vld [vmem:[#allocation2 + $0x8] sm:$0xff]  ;;  %v82_v7 = vand.u32 2147483647, %v1468_v4  ;;  %v124_v9 = vld [vmem:[#allocation5 + $0x50] sm:$0xff]  ;;  %v123_v12 = vld [vmem:[#allocation5 + $0x48] sm:$0xff]  ;;  %v76_v36 = vmax.f32 %v1468_v4, 0.0  ;;  %vm78_vm2 = vcmp.ne.f32.partialorder %v1468_v4, %v1468_v4  ;;  %p1387_p7 = scmp.lt.s32.totalorder %s898_s18, %s898_s18 }
  0x34   :  { %1039 = vmatprep.subr.mxu0 %v128_v1  ;;  %v125_v6 = vld [vmem:[#allocation5 + $0x58] sm:$0xff]  ;;  %v83_v8 = vand.u32 2147483647, %v1470_v5  ;;  %v122_v15 = vld [vmem:[#allocation5 + $0x40] sm:$0xff]  ;;  %v120_v17 = vld [vmem:[#allocation5 + $0x30] sm:$0xff]  ;;  %v77_v40 = vmax.f32 %v1470_v5, 0.0  ;;  %vm79_vm3 = vcmp.ne.f32.partialorder %v1470_v5, %v1470_v5 }
  0x35   :  { %1040 = vmatpush3.msra.mxu0 %v128_v1  ;;  %v84_v10 = vsub.f32 0.0, %v82_v7  ;;  %v121_v16 = vld [vmem:[#allocation5 + $0x38] sm:$0xff]  ;;  %v119_v18 = vld [vmem:[#allocation5 + $0x28] sm:$0xff]  ;;  %v118_v19 = vld [vmem:[#allocation5 + $0x20] sm:$0xff]  ;;  %s1382_s19 = scalar_lea.vmem %s898_s18, 256 }
  0x36   :  { %1041 = vmatprep.subr.mxu0 %v127_v2  ;;  %v85_v11 = vsub.f32 0.0, %v83_v8  ;;  %v117_v20 = vld [vmem:[#allocation5 + $0x18] sm:$0xff]  ;;  %v116_v21 = vld [vmem:[#allocation5 + $0x10] sm:$0xff]  ;;  %v115_v24 = vld [vmem:[#allocation5 + $0x8] sm:$0xff]  ;;  %p1383_p6 = scmp.ne.s32.totalorder %s898_s18, %s1382_s19  ;;  %p1388_p8 = scmp.lt.s32.totalorder %s1382_s19, %s1382_s19 }
  0x37   :  { %1042 = vmatpush3.msra.mxu0 %v127_v2  ;;  %v86_v13 = vmul.f32 1.442695, %v84_v10  ;;  %v114_v27 = vld [vmem:[#allocation5] sm:$0xff]  ;;  %v262_v51 = vld [vmem:[#allocation8 + $0x70] sm:$0xff]  ;;  %v261_v52 = vld [vmem:[#allocation8 + $0x68] sm:$0xff] }
  0x38   :  { %1043 = vmatprep.subr.mxu0 %v126_v3  ;;  %v88_v14 = vmul.f32 1.442695, %v85_v11  ;;  %v263_v50 = vld [vmem:[#allocation8 + $0x78] sm:$0xff]  ;;  %v260_v53 = vld [vmem:[#allocation8 + $0x60] sm:$0xff]  ;;  %v258_v55 = vld [vmem:[#allocation8 + $0x50] sm:$0xff]  ;;  %p1389_p9 = por %p1388_p8, %p1387_p7 }
  0x39   :  { %1044 = vmatpush3.msra.mxu0 %v126_v3  ;;  %1254 = vpow2.f32 %v86_v13  ;;  %1072 = vmatprep.subr.mxu1 %v263_v50  ;;  %v259_v54 = vld [vmem:[#allocation8 + $0x58] sm:$0xff]  ;;  %v257_v56 = vld [vmem:[#allocation8 + $0x48] sm:$0xff]  ;;  %v256_v57 = vld [vmem:[#allocation8 + $0x40] sm:$0xff] }
  0x3a   :  { %1045 = vmatprep.subr.mxu0 %v125_v6  ;;  %1256 = vpow2.f32 %v88_v14  ;;  %1073 = vmatpush3.msra.mxu1 %v263_v50  ;;  %v255_v58 = vld [vmem:[#allocation8 + $0x38] sm:$0xff]  ;;  %v254_v59 = vld [vmem:[#allocation8 + $0x30] sm:$0xff]  ;;  %v253_v60 = vld [vmem:[#allocation8 + $0x28] sm:$0xff]  ;;  %p1390_p10 = pnand %p1389_p9, %p1383_p6 }
  0x3b   :  { %1046 = vmatpush3.msra.mxu0 %v125_v6  ;;  %1074 = vmatprep.subr.mxu1 %v262_v51  ;;  %v252_v61 = vld [vmem:[#allocation8 + $0x20] sm:$0xff]  ;;  %v251_v62 = vld [vmem:[#allocation8 + $0x18] sm:$0xff]  ;;  %v250_v63 = vld [vmem:[#allocation8 + $0x10] sm:$0xff] }
  0x3c   :  { %1047 = vmatprep.subr.mxu0 %v124_v9  ;;  %1075 = vmatpush3.msra.mxu1 %v262_v51  ;;  %v249_v0 = vld [vmem:[#allocation8 + $0x8] sm:$0xff]  ;;  %v248_v1 = vld [vmem:[#allocation8] sm:$0xff]  ;;  %v913_v2 = vld [vmem:[#allocation7] ss:$0 sm:$0xff] }
  0x3d   :  { %1048 = vmatpush3.msra.mxu0 %v124_v9  ;;  %1076 = vmatprep.subr.mxu1 %v261_v52  ;;  %v391_v50 = vld [vmem:[#allocation5 + $0xb0] sm:$0xff]  ;;  %v390_v51 = vld [vmem:[#allocation5 + $0xa8] sm:$0xff] }
  0x3e   :  { %1049 = vmatprep.subr.mxu0 %v123_v12  ;;  %1077 = vmatpush3.msra.mxu1 %v261_v52  ;;  %v389_v52 = vld [vmem:[#allocation5 + $0xa0] sm:$0xff] }
  0x3f   :  { %1050 = vmatpush3.msra.mxu0 %v123_v12  ;;  %1078 = vmatprep.subr.mxu1 %v260_v53 }
  0x40   :  { %1051 = vmatprep.subr.mxu0 %v122_v15  ;;  %1079 = vmatpush3.msra.mxu1 %v260_v53  ;;  %v388_v53 = vld [vmem:[#allocation5 + $0x98] sm:$0xff] }
  0x41   :  { %1052 = vmatpush3.msra.mxu0 %v122_v15  ;;  %1080 = vmatprep.subr.mxu1 %v259_v54 }
  0x42   :  { %1053 = vmatprep.subr.mxu0 %v121_v16  ;;  %1081 = vmatpush3.msra.mxu1 %v259_v54  ;;  %v387_v54 = vld [vmem:[#allocation5 + $0x90] sm:$0xff] }
  0x43   :  { %1054 = vmatpush3.msra.mxu0 %v121_v16  ;;  %1082 = vmatprep.subr.mxu1 %v258_v55 }
  0x44   :  { %1055 = vmatprep.subr.mxu0 %v120_v17  ;;  %1083 = vmatpush3.msra.mxu1 %v258_v55  ;;  %v386_v55 = vld [vmem:[#allocation5 + $0x88] sm:$0xff] }
  0x45   :  { %1056 = vmatpush3.msra.mxu0 %v120_v17  ;;  %1084 = vmatprep.subr.mxu1 %v257_v56 }
  0x46   :  { %1057 = vmatprep.subr.mxu0 %v119_v18  ;;  %v1255_v22 = vpop.eup %1254  ;;  %1085 = vmatpush3.msra.mxu1 %v257_v56  ;;  %v385_v56 = vld [vmem:[#allocation5 + $0x80] sm:$0xff] }
  0x47   :  { %1058 = vmatpush3.msra.mxu0 %v119_v18  ;;  %v1257_v23 = vpop.eup %1256  ;;  %v90_v25 = vadd.f32 1.0, %v1255_v22  ;;  %v93_v28 = vmul.f32 -0.5, %v1255_v22  ;;  %v96_v31 = vand.u32 2147483647, %v1255_v22  ;;  %1086 = vmatprep.subr.mxu1 %v256_v57 }
  0x48   :  { %1059 = vmatprep.subr.mxu0 %v118_v19  ;;  %v99_v26 = vadd.f32 1.0, %v1257_v23  ;;  %v102_v29 = vmul.f32 -0.5, %v1257_v23  ;;  %v105_v33 = vand.u32 2147483647, %v1257_v23  ;;  %1087 = vmatpush3.msra.mxu1 %v256_v57  ;;  %v916_v57 = vld [vmem:[%s1535_s4] ss:$0 sm:$0xff] }
  0x49   :  { %1060 = vmatpush3.msra.mxu0 %v118_v19  ;;  %1258 = vlog2.f32 %v90_v25  ;;  %v94_v30 = vadd.f32 1.0, %v93_v28  ;;  %vm97_vm0 = vcmp.lt.f32.partialorder %v96_v31, 0.0004427343  ;;  %1088 = vmatprep.subr.mxu1 %v255_v58 }
  0x4a   :  { %1061 = vmatprep.subr.mxu0 %v117_v20  ;;  %1260 = vlog2.f32 %v99_v26  ;;  %v103_v32 = vadd.f32 1.0, %v102_v29  ;;  %vm106_vm1 = vcmp.lt.f32.partialorder %v105_v33, 0.0004427343  ;;  %1089 = vmatpush3.msra.mxu1 %v255_v58 }
  0x4b   :  { %1062 = vmatpush3.msra.mxu0 %v117_v20  ;;  %v95_v34 = vmul.f32 %v1255_v22, %v94_v30  ;;  %1090 = vmatprep.subr.mxu1 %v254_v59 }
  0x4c   :  { %1063 = vmatprep.subr.mxu0 %v116_v21  ;;  %v104_v37 = vmul.f32 %v1257_v23, %v103_v32  ;;  %1091 = vmatpush3.msra.mxu1 %v254_v59 }
  0x4d   :  { %1064 = vmatpush3.msra.mxu0 %v116_v21  ;;  %1092 = vmatprep.subr.mxu1 %v253_v60 }
  0x4e   :  { %1065 = vmatprep.subr.mxu0 %v115_v24  ;;  %1093 = vmatpush3.msra.mxu1 %v253_v60 }
  0x4f   :  { %1066 = vmatpush3.msra.mxu0 %v115_v24  ;;  %1094 = vmatprep.subr.mxu1 %v252_v61 }
  0x50   :  { %1067 = vmatprep.subr.mxu0 %v114_v27  ;;  %1095 = vmatpush3.msra.mxu1 %v252_v61 }
  0x51   :  { %1068 = vmatpush3.msra.mxu0 %v114_v27  ;;  %1096 = vmatprep.subr.mxu1 %v251_v62 }
  0x52   :  { %1097 = vmatpush3.msra.mxu1 %v251_v62 }
  0x53   :  { %1098 = vmatprep.subr.mxu1 %v250_v63 }
  0x54   :  { %1099 = vmatpush3.msra.mxu1 %v250_v63 }
  0x55   :  { %1100 = vmatprep.subr.mxu1 %v249_v0 }
  0x56   :  { %v1259_v35 = vpop.eup %1258  ;;  %1101 = vmatpush3.msra.mxu1 %v249_v0 }
  0x57   :  { %v1261_v38 = vpop.eup %1260  ;;  %v92_v39 = vmul.f32 0.6931472, %v1259_v35  ;;  %1102 = vmatprep.subr.mxu1 %v248_v1 }
  0x58   :  { %v101_v41 = vmul.f32 0.6931472, %v1261_v38  ;;  %1103 = vmatpush3.msra.mxu1 %v248_v1 }
  0x59   :  { %v98_v42 = vsel %vm97_vm0, %v95_v34, %v92_v39 }
  0x5a   :  { %v108_v43 = vadd.f32 %v98_v42, %v76_v36  ;;  %v107_v44 = vsel %vm106_vm1, %v104_v37, %v101_v41  ;;  %v400_v41 = vld [vmem:[#allocation5 + $0xf8] sm:$0xff]  ;;  %v399_v42 = vld [vmem:[#allocation5 + $0xf0] sm:$0xff] }
  0x5b   :  { %v109_v45 = vadd.f32 %v107_v44, %v77_v40  ;;  %1107 = vmatprep.subr.mxu0 %v400_v41  ;;  %v397_v44 = vld [vmem:[#allocation5 + $0xe0] sm:$0xff] }
  0x5c   :  { %v110_v46 = vsel %vm78_vm2, %v1468_v4, %v108_v43  ;;  %v398_v43 = vld [vmem:[#allocation5 + $0xe8] sm:$0xff] }
  0x5d   :  { %v911_v47 = vadd.f32 -0.6931472, %v110_v46  ;;  %v111_v48 = vsel %vm79_vm3, %v1470_v5, %v109_v45  ;;  %v396_v45 = vld [vmem:[#allocation5 + $0xd8] sm:$0xff]  ;;  %v395_v46 = vld [vmem:[#allocation5 + $0xd0] sm:$0xff] }
  0x5e   :  { %v912_v49 = vadd.f32 -0.6931472, %v111_v48  ;;  %v393_v48 = vld [vmem:[#allocation5 + $0xc0] sm:$0xff] }
  0x5f   :  { %1069 = vmatprep.mubr.f32.mxu0 %v911_v47  ;;  %v394_v47 = vld [vmem:[#allocation5 + $0xc8] sm:$0xff] }
  0x60   :  { %1070 = vmatmul.mubr.f32.vlgmr.msra.gmra.mxu0 %v912_v49  ;;  %v392_v49 = vld [vmem:[#allocation5 + $0xb8] sm:$0xff] }
  0x61   :  { %1108 = vmatpush3.msra.mxu0 %v400_v41  ;;  %v526_v41 = vld [vmem:[#allocation8 + $0xb0] sm:$0xff] }
  0x62   :  { %1109 = vmatprep.subr.mxu0 %v399_v42 }
  0x63   :  { %1110 = vmatpush3.msra.mxu0 %v399_v42  ;;  %v525_v42 = vld [vmem:[#allocation8 + $0xa8] sm:$0xff] }
  0x64   :  { %1111 = vmatprep.subr.mxu0 %v398_v43 }
  0x65   :  { %1112 = vmatpush3.msra.mxu0 %v398_v43  ;;  %v524_v43 = vld [vmem:[#allocation8 + $0xa0] sm:$0xff] }
  0x66   :  { %1113 = vmatprep.subr.mxu0 %v397_v44 }
  0x67   :  { %1114 = vmatpush3.msra.mxu0 %v397_v44  ;;  %v523_v44 = vld [vmem:[#allocation8 + $0x98] sm:$0xff] }
  0x68   :  { %1115 = vmatprep.subr.mxu0 %v396_v45 }
  0x69   :  { %1116 = vmatpush3.msra.mxu0 %v396_v45  ;;  %v522_v45 = vld [vmem:[#allocation8 + $0x90] sm:$0xff] }
  0x6a   :  { %1117 = vmatprep.subr.mxu0 %v395_v46 }
  0x6b   :  { %1118 = vmatpush3.msra.mxu0 %v395_v46  ;;  %v521_v46 = vld [vmem:[#allocation8 + $0x88] sm:$0xff] }
  0x6c   :  { %1119 = vmatprep.subr.mxu0 %v394_v47 }
  0x6d   :  { %1120 = vmatpush3.msra.mxu0 %v394_v47  ;;  %v520_v47 = vld [vmem:[#allocation8 + $0x80] sm:$0xff] }
  0x6e   :  { %1121 = vmatprep.subr.mxu0 %v393_v48 }
  0x6f   :  { %1122 = vmatpush3.msra.mxu0 %v393_v48  ;;  %v919_v48 = vld [vmem:[#allocation7 + $0x1] ss:$0 sm:$0xff] }
  0x70   :  { %1123 = vmatprep.subr.mxu0 %v392_v49 }
  0x71   :  { %1124 = vmatpush3.msra.mxu0 %v392_v49 }
  0x72   :  { %1125 = vmatprep.subr.mxu0 %v391_v50 }
  0x73   :  { %1126 = vmatpush3.msra.mxu0 %v391_v50 }
  0x74   :  { %1127 = vmatprep.subr.mxu0 %v390_v51 }
  0x75   :  { %1128 = vmatpush3.msra.mxu0 %v390_v51 }
  0x76   :  { %1129 = vmatprep.subr.mxu0 %v389_v52 }
  0x77   :  { %1130 = vmatpush3.msra.mxu0 %v389_v52 }
  0x78   :  { %1131 = vmatprep.subr.mxu0 %v388_v53 }
  0x79   :  { %1132 = vmatpush3.msra.mxu0 %v388_v53 }
  0x7a   :  { %1133 = vmatprep.subr.mxu0 %v387_v54 }
  0x7b   :  { %1134 = vmatpush3.msra.mxu0 %v387_v54 }
  0x7c   :  { %1135 = vmatprep.subr.mxu0 %v386_v55 }
  0x7d   :  { %1136 = vmatpush3.msra.mxu0 %v386_v55 }
  0x7e   :  { %1137 = vmatprep.subr.mxu0 %v385_v56 }
  0x7f   :  { %1138 = vmatpush3.msra.mxu0 %v385_v56 }
 0x120   :  { %v1071_v3 = vpop.f32.mrf.mxu0 }
 0x121   :  { %v207_v6 = vadd.f32 %v1071_v3, %v913_v2 }
 0x122   :  { %v201_v7 = vpop.f32.mrf.mxu0 }
 0x123   :  { %v217_v8 = vand.u32 2147483647, %v207_v6  ;;  %v202_v9 = vadd.f32 %v913_v2, %v201_v7  ;;  %v211_v29 = vmax.f32 %v207_v6, 0.0  ;;  %vm213_vm6 = vcmp.ne.f32.partialorder %v207_v6, %v207_v6 }
 0x125   :  { %v219_v10 = vsub.f32 0.0, %v217_v8  ;;  %v216_v11 = vand.u32 2147483647, %v202_v9  ;;  %v210_v33 = vmax.f32 %v202_v9, 0.0  ;;  %vm212_vm7 = vcmp.ne.f32.partialorder %v202_v9, %v202_v9 }
 0x127   :  { %v222_v12 = vmul.f32 1.442695, %v219_v10  ;;  %v218_v13 = vsub.f32 0.0, %v216_v11 }
 0x129   :  { %1262 = vpow2.f32 %v222_v12  ;;  %v220_v14 = vmul.f32 1.442695, %v218_v13 }
 0x12b   :  { %1264 = vpow2.f32 %v220_v14 }
 0x136   :  { %v1263_v15 = vpop.eup %1262 }
 0x137   :  { %v233_v16 = vadd.f32 1.0, %v1263_v15  ;;  %v236_v19 = vmul.f32 -0.5, %v1263_v15  ;;  %v239_v22 = vand.u32 2147483647, %v1263_v15 }
 0x138   :  { %v1265_v17 = vpop.eup %1264 }
 0x139   :  { %v224_v18 = vadd.f32 1.0, %v1265_v17  ;;  %1266 = vlog2.f32 %v233_v16  ;;  %v227_v20 = vmul.f32 -0.5, %v1265_v17  ;;  %v237_v21 = vadd.f32 1.0, %v236_v19 }
 0x13a   :  { %v230_v25 = vand.u32 2147483647, %v1265_v17  ;;  %vm240_vm4 = vcmp.lt.f32.partialorder %v239_v22, 0.0004427343 }
 0x13b   :  { %1268 = vlog2.f32 %v224_v18  ;;  %v228_v23 = vadd.f32 1.0, %v227_v20  ;;  %v238_v27 = vmul.f32 %v1263_v15, %v237_v21 }
 0x13c   :  { %vm231_vm5 = vcmp.lt.f32.partialorder %v230_v25, 0.0004427343 }
 0x13d   :  { %v229_v31 = vmul.f32 %v1265_v17, %v228_v23 }
 0x146   :  { %v1267_v24 = vpop.eup %1266 }
 0x147   :  { %v235_v26 = vmul.f32 0.6931472, %v1267_v24 }
 0x148   :  { %v1269_v28 = vpop.eup %1268 }
 0x149   :  { %v226_v30 = vmul.f32 0.6931472, %v1269_v28  ;;  %v241_v32 = vsel %vm240_vm4, %v238_v27, %v235_v26 }
 0x14a   :  { %v243_v34 = vadd.f32 %v241_v32, %v211_v29  ;;  %v535_v32 = vld [vmem:[#allocation8 + $0xf8] sm:$0xff] }
 0x14b   :  { %v232_v35 = vsel %vm231_vm5, %v229_v31, %v226_v30  ;;  %1142 = vmatprep.subr.mxu1 %v535_v32 }
 0x14c   :  { %v242_v36 = vadd.f32 %v232_v35, %v210_v33  ;;  %v245_v37 = vsel %vm213_vm6, %v207_v6, %v243_v34  ;;  %v534_v33 = vld [vmem:[#allocation8 + $0xf0] sm:$0xff]  ;;  %v533_v34 = vld [vmem:[#allocation8 + $0xe8] sm:$0xff]  ;;  %v532_v35 = vld [vmem:[#allocation8 + $0xe0] sm:$0xff] }
 0x14d   :  { %v915_v40 = vadd.f32 -0.6931472, %v245_v37  ;;  %v530_v37 = vld [vmem:[#allocation8 + $0xd0] sm:$0xff] }
 0x14e   :  { %v244_v38 = vsel %vm212_vm7, %v202_v9, %v242_v36  ;;  %v531_v36 = vld [vmem:[#allocation8 + $0xd8] sm:$0xff] }
 0x14f   :  { %v914_v39 = vadd.f32 -0.6931472, %v244_v38  ;;  %v529_v38 = vld [vmem:[#allocation8 + $0xc8] sm:$0xff] }
 0x151   :  { %1104 = vmatprep.mubr.f32.mxu1 %v914_v39  ;;  %v528_v39 = vld [vmem:[#allocation8 + $0xc0] sm:$0xff] }
 0x152   :  { %1105 = vmatmul.mubr.f32.vlgmr.msra.gmra.mxu1 %v915_v40  ;;  %v527_v40 = vld [vmem:[#allocation8 + $0xb8] sm:$0xff] }
 0x153   :  { %1143 = vmatpush3.msra.mxu1 %v535_v32  ;;  %v663_v32 = vld [vmem:[#allocation5 + $0x130] sm:$0xff] }
 0x154   :  { %1144 = vmatprep.subr.mxu1 %v534_v33 }
 0x155   :  { %1145 = vmatpush3.msra.mxu1 %v534_v33  ;;  %v662_v33 = vld [vmem:[#allocation5 + $0x128] sm:$0xff] }
 0x156   :  { %1146 = vmatprep.subr.mxu1 %v533_v34 }
 0x157   :  { %1147 = vmatpush3.msra.mxu1 %v533_v34  ;;  %v661_v34 = vld [vmem:[#allocation5 + $0x120] sm:$0xff] }
 0x158   :  { %1148 = vmatprep.subr.mxu1 %v532_v35 }
 0x159   :  { %1149 = vmatpush3.msra.mxu1 %v532_v35  ;;  %v660_v35 = vld [vmem:[#allocation5 + $0x118] sm:$0xff] }
 0x15a   :  { %1150 = vmatprep.subr.mxu1 %v531_v36 }
 0x15b   :  { %1151 = vmatpush3.msra.mxu1 %v531_v36  ;;  %v659_v36 = vld [vmem:[#allocation5 + $0x110] sm:$0xff] }
 0x15c   :  { %1152 = vmatprep.subr.mxu1 %v530_v37 }
 0x15d   :  { %1153 = vmatpush3.msra.mxu1 %v530_v37  ;;  %v658_v37 = vld [vmem:[#allocation5 + $0x108] sm:$0xff] }
 0x15e   :  { %1154 = vmatprep.subr.mxu1 %v529_v38 }
 0x15f   :  { %1155 = vmatpush3.msra.mxu1 %v529_v38  ;;  %v657_v38 = vld [vmem:[#allocation5 + $0x100] sm:$0xff] }
 0x160   :  { %1156 = vmatprep.subr.mxu1 %v528_v39 }
 0x161   :  { %1157 = vmatpush3.msra.mxu1 %v528_v39  ;;  %v922_v39 = vld [vmem:[%s1535_s4 + $0x1] ss:$0 sm:$0xff] }
 0x162   :  { %1158 = vmatprep.subr.mxu1 %v527_v40 }
 0x163   :  { %1159 = vmatpush3.msra.mxu1 %v527_v40 }
 0x164   :  { %1160 = vmatprep.subr.mxu1 %v526_v41 }
 0x165   :  { %1161 = vmatpush3.msra.mxu1 %v526_v41 }
 0x166   :  { %1162 = vmatprep.subr.mxu1 %v525_v42 }
 0x167   :  { %1163 = vmatpush3.msra.mxu1 %v525_v42 }
 0x168   :  { %1164 = vmatprep.subr.mxu1 %v524_v43 }
 0x169   :  { %1165 = vmatpush3.msra.mxu1 %v524_v43 }
 0x16a   :  { %1166 = vmatprep.subr.mxu1 %v523_v44 }
 0x16b   :  { %1167 = vmatpush3.msra.mxu1 %v523_v44 }
 0x16c   :  { %1168 = vmatprep.subr.mxu1 %v522_v45 }
 0x16d   :  { %1169 = vmatpush3.msra.mxu1 %v522_v45 }
 0x16e   :  { %1170 = vmatprep.subr.mxu1 %v521_v46 }
 0x16f   :  { %1171 = vmatpush3.msra.mxu1 %v521_v46 }
 0x170   :  { %1172 = vmatprep.subr.mxu1 %v520_v47 }
 0x171   :  { %1173 = vmatpush3.msra.mxu1 %v520_v47 }
 0x212   :  { %v1106_v58 = vpop.f32.mrf.mxu1 }
 0x213   :  { %v341_v59 = vadd.f32 %v1106_v58, %v916_v57 }
 0x214   :  { %v335_v60 = vpop.f32.mrf.mxu1 }
 0x215   :  { %v1486_v61 = vadd.f32 %v341_v59, %v1470_v5  ;;  %v336_v62 = vadd.f32 %v916_v57, %v335_v60 }
 0x217   :  { %v353_v63 = vand.u32 2147483647, %v1486_v61  ;;  %v1490_v0 = vadd.f32 %v336_v62, %v1468_v4  ;;  %v347_v20 = vmax.f32 %v1486_v61, 0.0  ;;  %vm349_vm10 = vcmp.ne.f32.partialorder %v1486_v61, %v1486_v61 }
 0x219   :  { %v355_v1 = vsub.f32 0.0, %v353_v63  ;;  %v352_v2 = vand.u32 2147483647, %v1490_v0  ;;  %v346_v24 = vmax.f32 %v1490_v0, 0.0  ;;  %vm348_vm11 = vcmp.ne.f32.partialorder %v1490_v0, %v1490_v0 }
 0x21b   :  { %v358_v3 = vmul.f32 1.442695, %v355_v1  ;;  %v354_v6 = vsub.f32 0.0, %v352_v2 }
 0x21d   :  { %1270 = vpow2.f32 %v358_v3  ;;  %v356_v7 = vmul.f32 1.442695, %v354_v6 }
 0x21f   :  { %1272 = vpow2.f32 %v356_v7 }
 0x22a   :  { %v1271_v8 = vpop.eup %1270 }
 0x22b   :  { %v369_v9 = vadd.f32 1.0, %v1271_v8  ;;  %v372_v5 = vmul.f32 -0.5, %v1271_v8  ;;  %v375_v14 = vand.u32 2147483647, %v1271_v8 }
 0x22c   :  { %v1273_v10 = vpop.eup %1272 }
 0x22d   :  { %v360_v11 = vadd.f32 1.0, %v1273_v10  ;;  %1274 = vlog2.f32 %v369_v9  ;;  %v363_v12 = vmul.f32 -0.5, %v1273_v10  ;;  %v373_v13 = vadd.f32 1.0, %v372_v5 }
 0x22e   :  { %v366_v16 = vand.u32 2147483647, %v1273_v10  ;;  %vm376_vm8 = vcmp.lt.f32.partialorder %v375_v14, 0.0004427343 }
 0x22f   :  { %1276 = vlog2.f32 %v360_v11  ;;  %v364_v4 = vadd.f32 1.0, %v363_v12  ;;  %v374_v18 = vmul.f32 %v1271_v8, %v373_v13 }
 0x230   :  { %vm367_vm9 = vcmp.lt.f32.partialorder %v366_v16, 0.0004427343 }
 0x231   :  { %v365_v22 = vmul.f32 %v1273_v10, %v364_v4 }
 0x23a   :  { %v1275_v15 = vpop.eup %1274 }
 0x23b   :  { %v371_v17 = vmul.f32 0.6931472, %v1275_v15 }
 0x23c   :  { %v1277_v19 = vpop.eup %1276 }
 0x23d   :  { %v362_v21 = vmul.f32 0.6931472, %v1277_v19  ;;  %v377_v23 = vsel %vm376_vm8, %v374_v18, %v371_v17 }
 0x23e   :  { %v379_v25 = vadd.f32 %v377_v23, %v347_v20  ;;  %v672_v23 = vld [vmem:[#allocation5 + $0x178] sm:$0xff] }
 0x23f   :  { %v368_v26 = vsel %vm367_vm9, %v365_v22, %v362_v21  ;;  %1177 = vmatprep.subr.mxu0 %v672_v23 }
 0x240   :  { %v378_v27 = vadd.f32 %v368_v26, %v346_v24  ;;  %v381_v28 = vsel %vm349_vm10, %v1486_v61, %v379_v25  ;;  %v671_v24 = vld [vmem:[#allocation5 + $0x170] sm:$0xff]  ;;  %v670_v25 = vld [vmem:[#allocation5 + $0x168] sm:$0xff]  ;;  %v669_v26 = vld [vmem:[#allocation5 + $0x160] sm:$0xff] }
 0x241   :  { %v918_v31 = vadd.f32 -0.6931472, %v381_v28  ;;  %v667_v28 = vld [vmem:[#allocation5 + $0x150] sm:$0xff] }
 0x242   :  { %v380_v29 = vsel %vm348_vm11, %v1490_v0, %v378_v27  ;;  %v668_v27 = vld [vmem:[#allocation5 + $0x158] sm:$0xff] }
 0x243   :  { %v917_v30 = vadd.f32 -0.6931472, %v380_v29  ;;  %v666_v29 = vld [vmem:[#allocation5 + $0x148] sm:$0xff] }
 0x245   :  { %1139 = vmatprep.mubr.f32.mxu0 %v917_v30  ;;  %v665_v30 = vld [vmem:[#allocation5 + $0x140] sm:$0xff] }
 0x246   :  { %1140 = vmatmul.mubr.f32.vlgmr.msra.gmra.mxu0 %v918_v31  ;;  %v664_v31 = vld [vmem:[#allocation5 + $0x138] sm:$0xff] }
 0x247   :  { %1178 = vmatpush3.msra.mxu0 %v672_v23  ;;  %v798_v23 = vld [vmem:[#allocation8 + $0x130] sm:$0xff] }
 0x248   :  { %1179 = vmatprep.subr.mxu0 %v671_v24 }
 0x249   :  { %1180 = vmatpush3.msra.mxu0 %v671_v24  ;;  %v797_v24 = vld [vmem:[#allocation8 + $0x128] sm:$0xff] }
 0x24a   :  { %1181 = vmatprep.subr.mxu0 %v670_v25 }
 0x24b   :  { %1182 = vmatpush3.msra.mxu0 %v670_v25  ;;  %v796_v25 = vld [vmem:[#allocation8 + $0x120] sm:$0xff] }
 0x24c   :  { %1183 = vmatprep.subr.mxu0 %v669_v26 }
 0x24d   :  { %1184 = vmatpush3.msra.mxu0 %v669_v26  ;;  %v795_v26 = vld [vmem:[#allocation8 + $0x118] sm:$0xff] }
 0x24e   :  { %1185 = vmatprep.subr.mxu0 %v668_v27 }
 0x24f   :  { %1186 = vmatpush3.msra.mxu0 %v668_v27  ;;  %v794_v27 = vld [vmem:[#allocation8 + $0x110] sm:$0xff] }
 0x250   :  { %1187 = vmatprep.subr.mxu0 %v667_v28 }
 0x251   :  { %1188 = vmatpush3.msra.mxu0 %v667_v28  ;;  %v793_v28 = vld [vmem:[#allocation8 + $0x108] sm:$0xff] }
 0x252   :  { %1189 = vmatprep.subr.mxu0 %v666_v29 }
 0x253   :  { %1190 = vmatpush3.msra.mxu0 %v666_v29  ;;  %v792_v29 = vld [vmem:[#allocation8 + $0x100] sm:$0xff] }
 0x254   :  { %1191 = vmatprep.subr.mxu0 %v665_v30 }
 0x255   :  { %1192 = vmatpush3.msra.mxu0 %v665_v30  ;;  %v925_v30 = vld [vmem:[#allocation7 + $0x2] ss:$0 sm:$0xff] }
 0x256   :  { %1193 = vmatprep.subr.mxu0 %v664_v31 }
 0x257   :  { %1194 = vmatpush3.msra.mxu0 %v664_v31 }
 0x258   :  { %1195 = vmatprep.subr.mxu0 %v663_v32 }
 0x259   :  { %1196 = vmatpush3.msra.mxu0 %v663_v32 }
 0x25a   :  { %1197 = vmatprep.subr.mxu0 %v662_v33 }
 0x25b   :  { %1198 = vmatpush3.msra.mxu0 %v662_v33 }
 0x25c   :  { %1199 = vmatprep.subr.mxu0 %v661_v34 }
 0x25d   :  { %1200 = vmatpush3.msra.mxu0 %v661_v34 }
 0x25e   :  { %1201 = vmatprep.subr.mxu0 %v660_v35 }
 0x25f   :  { %1202 = vmatpush3.msra.mxu0 %v660_v35 }
 0x260   :  { %1203 = vmatprep.subr.mxu0 %v659_v36 }
 0x261   :  { %1204 = vmatpush3.msra.mxu0 %v659_v36 }
 0x262   :  { %1205 = vmatprep.subr.mxu0 %v658_v37 }
 0x263   :  { %1206 = vmatpush3.msra.mxu0 %v658_v37 }
 0x264   :  { %1207 = vmatprep.subr.mxu0 %v657_v38 }
 0x265   :  { %1208 = vmatpush3.msra.mxu0 %v657_v38 }
 0x306   :  { %v1141_v49 = vpop.f32.mrf.mxu0 }
 0x307   :  { %v478_v50 = vadd.f32 %v1141_v49, %v919_v48 }
 0x308   :  { %v472_v51 = vpop.f32.mrf.mxu0 }
 0x309   :  { %v488_v52 = vand.u32 2147483647, %v478_v50  ;;  %v473_v53 = vadd.f32 %v919_v48, %v472_v51  ;;  %v482_v12 = vmax.f32 %v478_v50, 0.0  ;;  %vm484_vm14 = vcmp.ne.f32.partialorder %v478_v50, %v478_v50 }
 0x30b   :  { %v490_v54 = vsub.f32 0.0, %v488_v52  ;;  %v487_v55 = vand.u32 2147483647, %v473_v53  ;;  %v481_v16 = vmax.f32 %v473_v53, 0.0  ;;  %vm483_vm15 = vcmp.ne.f32.partialorder %v473_v53, %v473_v53 }
 0x30d   :  { %v493_v56 = vmul.f32 1.442695, %v490_v54  ;;  %v489_v57 = vsub.f32 0.0, %v487_v55 }
 0x30f   :  { %1278 = vpow2.f32 %v493_v56  ;;  %v491_v58 = vmul.f32 1.442695, %v489_v57 }
 0x311   :  { %1280 = vpow2.f32 %v491_v58 }
 0x31c   :  { %v1279_v59 = vpop.eup %1278 }
 0x31d   :  { %v504_v60 = vadd.f32 1.0, %v1279_v59  ;;  %v507_v1 = vmul.f32 -0.5, %v1279_v59  ;;  %v510_v6 = vand.u32 2147483647, %v1279_v59 }
 0x31e   :  { %v1281_v62 = vpop.eup %1280 }
 0x31f   :  { %1282 = vlog2.f32 %v504_v60  ;;  %v495_v63 = vadd.f32 1.0, %v1281_v62  ;;  %v498_v2 = vmul.f32 -0.5, %v1281_v62  ;;  %v508_v3 = vadd.f32 1.0, %v507_v1 }
 0x320   :  { %v501_v9 = vand.u32 2147483647, %v1281_v62  ;;  %vm511_vm12 = vcmp.lt.f32.partialorder %v510_v6, 0.0004427343 }
 0x321   :  { %1284 = vlog2.f32 %v495_v63  ;;  %v499_v7 = vadd.f32 1.0, %v498_v2  ;;  %v509_v11 = vmul.f32 %v1279_v59, %v508_v3 }
 0x322   :  { %vm502_vm13 = vcmp.lt.f32.partialorder %v501_v9, 0.0004427343 }
 0x323   :  { %v500_v4 = vmul.f32 %v1281_v62, %v499_v7 }
 0x32c   :  { %v1283_v8 = vpop.eup %1282 }
 0x32d   :  { %v506_v10 = vmul.f32 0.6931472, %v1283_v8 }
 0x32e   :  { %v1285_v5 = vpop.eup %1284 }
 0x32f   :  { %v512_v13 = vsel %vm511_vm12, %v509_v11, %v506_v10  ;;  %v497_v14 = vmul.f32 0.6931472, %v1285_v5 }
 0x330   :  { %v514_v15 = vadd.f32 %v512_v13, %v482_v12 }
 0x331   :  { %v503_v17 = vsel %vm502_vm13, %v500_v4, %v497_v14  ;;  %v807_v4 = vld [vmem:[#allocation8 + $0x178] sm:$0xff] }
 0x332   :  { %v513_v18 = vadd.f32 %v503_v17, %v481_v16  ;;  %v516_v19 = vsel %vm484_vm14, %v478_v50, %v514_v15  ;;  %1212 = vmatprep.subr.mxu1 %v807_v4  ;;  %v806_v15 = vld [vmem:[#allocation8 + $0x170] sm:$0xff]  ;;  %v805_v16 = vld [vmem:[#allocation8 + $0x168] sm:$0xff]  ;;  %v804_v17 = vld [vmem:[#allocation8 + $0x160] sm:$0xff] }
 0x333   :  { %v921_v22 = vadd.f32 -0.6931472, %v516_v19  ;;  %v802_v19 = vld [vmem:[#allocation8 + $0x150] sm:$0xff] }
 0x334   :  { %v515_v20 = vsel %vm483_vm15, %v473_v53, %v513_v18  ;;  %v803_v18 = vld [vmem:[#allocation8 + $0x158] sm:$0xff] }
 0x335   :  { %v920_v21 = vadd.f32 -0.6931472, %v515_v20  ;;  %v801_v20 = vld [vmem:[#allocation8 + $0x148] sm:$0xff] }
 0x337   :  { %1174 = vmatprep.mubr.f32.mxu1 %v920_v21  ;;  %v800_v21 = vld [vmem:[#allocation8 + $0x140] sm:$0xff] }
 0x338   :  { %1175 = vmatmul.mubr.f32.vlgmr.msra.gmra.mxu1 %v921_v22  ;;  %v799_v22 = vld [vmem:[#allocation8 + $0x138] sm:$0xff] }
 0x339   :  { %1213 = vmatpush3.msra.mxu1 %v807_v4 }
 0x33a   :  { %1214 = vmatprep.subr.mxu1 %v806_v15 }
 0x33b   :  { %1215 = vmatpush3.msra.mxu1 %v806_v15 }
 0x33c   :  { %1216 = vmatprep.subr.mxu1 %v805_v16 }
 0x33d   :  { %1217 = vmatpush3.msra.mxu1 %v805_v16 }
 0x33e   :  { %1218 = vmatprep.subr.mxu1 %v804_v17 }
 0x33f   :  { %1219 = vmatpush3.msra.mxu1 %v804_v17 }
 0x340   :  { %1220 = vmatprep.subr.mxu1 %v803_v18 }
 0x341   :  { %1221 = vmatpush3.msra.mxu1 %v803_v18 }
 0x342   :  { %1222 = vmatprep.subr.mxu1 %v802_v19 }
 0x343   :  { %1223 = vmatpush3.msra.mxu1 %v802_v19 }
 0x344   :  { %1224 = vmatprep.subr.mxu1 %v801_v20 }
 0x345   :  { %1225 = vmatpush3.msra.mxu1 %v801_v20 }
 0x346   :  { %1226 = vmatprep.subr.mxu1 %v800_v21 }
 0x347   :  { %1227 = vmatpush3.msra.mxu1 %v800_v21 }
 0x348   :  { %1228 = vmatprep.subr.mxu1 %v799_v22 }
 0x349   :  { %1229 = vmatpush3.msra.mxu1 %v799_v22 }
 0x34a   :  { %1230 = vmatprep.subr.mxu1 %v798_v23 }
 0x34b   :  { %1231 = vmatpush3.msra.mxu1 %v798_v23 }
 0x34c   :  { %1232 = vmatprep.subr.mxu1 %v797_v24 }
 0x34d   :  { %1233 = vmatpush3.msra.mxu1 %v797_v24 }
 0x34e   :  { %1234 = vmatprep.subr.mxu1 %v796_v25 }
 0x34f   :  { %1235 = vmatpush3.msra.mxu1 %v796_v25 }
 0x350   :  { %1236 = vmatprep.subr.mxu1 %v795_v26 }
 0x351   :  { %1237 = vmatpush3.msra.mxu1 %v795_v26 }
 0x352   :  { %1238 = vmatprep.subr.mxu1 %v794_v27 }
 0x353   :  { %1239 = vmatpush3.msra.mxu1 %v794_v27 }
 0x354   :  { %1240 = vmatprep.subr.mxu1 %v793_v28 }
 0x355   :  { %1241 = vmatpush3.msra.mxu1 %v793_v28 }
 0x356   :  { %1242 = vmatprep.subr.mxu1 %v792_v29 }
 0x357   :  { %1243 = vmatpush3.msra.mxu1 %v792_v29 }
 0x3f8   :  { %v1176_v40 = vpop.f32.mrf.mxu1 }
 0x3f9   :  { %v613_v41 = vadd.f32 %v1176_v40, %v922_v39 }
 0x3fa   :  { %v607_v42 = vpop.f32.mrf.mxu1 }
 0x3fb   :  { %v1505_v43 = vadd.f32 %v613_v41, %v1486_v61  ;;  %v608_v44 = vadd.f32 %v922_v39, %v607_v42 }
 0x3fd   :  { %v625_v45 = vand.u32 2147483647, %v1505_v43  ;;  %v1509_v46 = vadd.f32 %v608_v44, %v1490_v0  ;;  %v619_v2 = vmax.f32 %v1505_v43, 0.0  ;;  %vm621_vm2 = vcmp.ne.f32.partialorder %v1505_v43, %v1505_v43 }
 0x3ff   :  { %v627_v47 = vsub.f32 0.0, %v625_v45  ;;  %v624_v48 = vand.u32 2147483647, %v1509_v46  ;;  %v618_v8 = vmax.f32 %v1509_v46, 0.0  ;;  %vm620_vm3 = vcmp.ne.f32.partialorder %v1509_v46, %v1509_v46 }
 0x401   :  { %v630_v49 = vmul.f32 1.442695, %v627_v47  ;;  %v626_v50 = vsub.f32 0.0, %v624_v48 }
 0x403   :  { %1286 = vpow2.f32 %v630_v49  ;;  %v628_v51 = vmul.f32 1.442695, %v626_v50 }
 0x405   :  { %1288 = vpow2.f32 %v628_v51 }
 0x410   :  { %v1287_v52 = vpop.eup %1286 }
 0x411   :  { %v641_v53 = vadd.f32 1.0, %v1287_v52  ;;  %v644_v61 = vmul.f32 -0.5, %v1287_v52  ;;  %v647_v58 = vand.u32 2147483647, %v1287_v52 }
 0x412   :  { %v1289_v54 = vpop.eup %1288 }
 0x413   :  { %v632_v55 = vadd.f32 1.0, %v1289_v54  ;;  %1290 = vlog2.f32 %v641_v53  ;;  %v635_v56 = vmul.f32 -0.5, %v1289_v54  ;;  %v645_v57 = vadd.f32 1.0, %v644_v61 }
 0x414   :  { %v638_v60 = vand.u32 2147483647, %v1289_v54  ;;  %vm648_vm0 = vcmp.lt.f32.partialorder %v647_v58, 0.0004427343 }
 0x415   :  { %1292 = vlog2.f32 %v632_v55  ;;  %v636_v0 = vadd.f32 1.0, %v635_v56  ;;  %v646_v63 = vmul.f32 %v1287_v52, %v645_v57 }
 0x416   :  { %vm639_vm1 = vcmp.lt.f32.partialorder %v638_v60, 0.0004427343 }
 0x417   :  { %v637_v6 = vmul.f32 %v1289_v54, %v636_v0 }
 0x420   :  { %v1291_v59 = vpop.eup %1290 }
 0x421   :  { %v643_v62 = vmul.f32 0.6931472, %v1291_v59 }
 0x422   :  { %v1293_v1 = vpop.eup %1292 }
 0x423   :  { %v634_v3 = vmul.f32 0.6931472, %v1293_v1  ;;  %v649_v7 = vsel %vm648_vm0, %v646_v63, %v643_v62 }
 0x424   :  { %v651_v9 = vadd.f32 %v649_v7, %v619_v2  ;;  %v928_v7 = vld [vmem:[%s1535_s4 + $0x2] ss:$0 sm:$0xff] }
 0x425   :  { %v640_v10 = vsel %vm639_vm1, %v637_v6, %v634_v3 }
 0x426   :  { %v650_v11 = vadd.f32 %v640_v10, %v618_v8  ;;  %v653_v5 = vsel %vm621_vm2, %v1505_v43, %v651_v9 }
 0x427   :  { %v924_v14 = vadd.f32 -0.6931472, %v653_v5 }
 0x428   :  { %v652_v12 = vsel %vm620_vm3, %v1509_v46, %v650_v11 }
 0x429   :  { %v923_v13 = vadd.f32 -0.6931472, %v652_v12 }
 0x42b   :  { %1209 = vmatprep.mubr.f32.mxu0 %v923_v13 }
 0x42c   :  { %1210 = vmatmul.mubr.f32.vlgmr.msra.gmra.mxu0 %v924_v14 }
 0x4ec   :  { %v1211_v31 = vpop.f32.mrf.mxu0 }
 0x4ed   :  { %v750_v32 = vadd.f32 %v1211_v31, %v925_v30 }
 0x4ee   :  { %v744_v33 = vpop.f32.mrf.mxu0 }
 0x4ef   :  { %v760_v34 = vand.u32 2147483647, %v750_v32  ;;  %v745_v35 = vadd.f32 %v925_v30, %v744_v33  ;;  %v754_v56 = vmax.f32 %v750_v32, 0.0  ;;  %vm756_vm6 = vcmp.ne.f32.partialorder %v750_v32, %v750_v32 }
 0x4f1   :  { %v762_v36 = vsub.f32 0.0, %v760_v34  ;;  %v759_v37 = vand.u32 2147483647, %v745_v35  ;;  %v753_v60 = vmax.f32 %v745_v35, 0.0  ;;  %vm755_vm7 = vcmp.ne.f32.partialorder %v745_v35, %v745_v35 }
 0x4f3   :  { %v765_v38 = vmul.f32 1.442695, %v762_v36  ;;  %v761_v39 = vsub.f32 0.0, %v759_v37 }
 0x4f5   :  { %1294 = vpow2.f32 %v765_v38  ;;  %v763_v40 = vmul.f32 1.442695, %v761_v39 }
 0x4f7   :  { %1296 = vpow2.f32 %v763_v40 }
 0x502   :  { %v1295_v41 = vpop.eup %1294 }
 0x503   :  { %v776_v42 = vadd.f32 1.0, %v1295_v41  ;;  %v779_v47 = vmul.f32 -0.5, %v1295_v41  ;;  %v782_v50 = vand.u32 2147483647, %v1295_v41 }
 0x504   :  { %v1297_v44 = vpop.eup %1296 }
 0x505   :  { %1298 = vlog2.f32 %v776_v42  ;;  %v767_v45 = vadd.f32 1.0, %v1297_v44  ;;  %v770_v48 = vmul.f32 -0.5, %v1297_v44  ;;  %v780_v49 = vadd.f32 1.0, %v779_v47 }
 0x506   :  { %v773_v53 = vand.u32 2147483647, %v1297_v44  ;;  %vm783_vm4 = vcmp.lt.f32.partialorder %v782_v50, 0.0004427343 }
 0x507   :  { %1300 = vlog2.f32 %v767_v45  ;;  %v771_v51 = vadd.f32 1.0, %v770_v48  ;;  %v781_v55 = vmul.f32 %v1295_v41, %v780_v49 }
 0x508   :  { %vm774_vm5 = vcmp.lt.f32.partialorder %v773_v53, 0.0004427343 }
 0x509   :  { %v772_v0 = vmul.f32 %v1297_v44, %v771_v51 }
 0x512   :  { %v1299_v52 = vpop.eup %1298 }
 0x513   :  { %v778_v54 = vmul.f32 0.6931472, %v1299_v52 }
 0x514   :  { %v1301_v61 = vpop.eup %1300 }
 0x515   :  { %v784_v57 = vsel %vm783_vm4, %v781_v55, %v778_v54  ;;  %v769_v58 = vmul.f32 0.6931472, %v1301_v61 }
 0x516   :  { %v786_v59 = vadd.f32 %v784_v57, %v754_v56 }
 0x517   :  { %v775_v62 = vsel %vm774_vm5, %v772_v0, %v769_v58 }
 0x518   :  { %v785_v63 = vadd.f32 %v775_v62, %v753_v60  ;;  %v788_v1 = vsel %vm756_vm6, %v750_v32, %v786_v59 }
 0x519   :  { %v927_v6 = vadd.f32 -0.6931472, %v788_v1 }
 0x51a   :  { %v787_v2 = vsel %vm755_vm7, %v745_v35, %v785_v63 }
 0x51b   :  { %v926_v3 = vadd.f32 -0.6931472, %v787_v2 }
 0x51d   :  { %1244 = vmatprep.mubr.f32.mxu1 %v926_v3 }
 0x51e   :  { %1245 = vmatmul.mubr.f32.vlgmr.msra.gmra.mxu1 %v927_v6 }
 0x5de   :  { %v1246_v8 = vpop.f32.mrf.mxu1 }
 0x5df   :  { %v885_v9 = vadd.f32 %v1246_v8, %v928_v7 }
 0x5e0   :  { %v879_v10 = vpop.f32.mrf.mxu1 }
 0x5e1   :  { %v889_v11 = vadd.f32 %v885_v9, %v1505_v43  ;;  %v880_v5 = vadd.f32 %v928_v7, %v879_v10 }
 0x5e3   :  { %891 = vst [vmem:[#allocation10 + $0x8] sm:$0xff] %v889_v11  ;;  %v888_v12 = vadd.f32 %v880_v5, %v1509_v46 }
 0x5e5   :  { %890 = vst [vmem:[#allocation10] sm:$0xff] %v888_v12 }
 0x5e6   :  { %1393 = shalt.err (!%p1390_p10)
}
 0x5e7   :  { %903 = dma.vmem_to_hbm [thread:$0]  %s898_s18, 256, %s1536_s5, [#allocation4], %s1412_s23, %s1412_s23, %s1413_s24  }
 0x5e8   :  { %1408 = dma.done.wait [#allocation4], 256  }
 0x5e9   :  { %1409 = vsyncadd [#allocation4], 4294967040 }
 0x5ea   :  { %907 = vsyncpa [#allocation3], 1 }
 0x5eb   :  { %908 = vsyncpa [#allocation6], 1 }
 0x5ec   :  { %909 = vsyncpa [#allocation9], 1 }
 0x5ed   :  { %910 = vsyncpa [#allocation4], 1 }

</bundles_post_ra>
